<compile_context>
chip_gen: v5e
topology: v5e:2x2
jax: 0.10.0
libtpu: 0.0.40
codegen_flags: <defaults>
</compile_context>

<pallas_src>
import functools

import jax
import jax.numpy as jnp
import numpy as np
from jax.experimental import pallas as pl
from jax.experimental.pallas import tpu as pltpu


# --------------------------------------------------------------------------
# Pallas kernel
# --------------------------------------------------------------------------
def _cgc_head_kernel(x_ref, b_ref, wexp_ref, bexp_ref, wg_ref, gamma_ref,
                     beta_ref, embt_ref, logits_ref, h_ref,
                     *, n_b, n_e_sh, n_e_sp, exp_chunk, ln_eps):
    n_e = n_e_sh + n_e_sp
    n_exp = n_e_sh + n_b * n_e_sp
    n_exp_pad = bexp_ref.shape[0]          # expert dim padded to a multiple of 8

    # ---- CGC mixing + LayerNorm + residual: once per N-tile (first vocab step)
    @pl.when(pl.program_id(1) == 0)
    def _compute_h():
        x = x_ref[...]                                       # (TN, d) f32
        tn, d = x.shape
        x_bf = x.astype(jnp.bfloat16)
        b = b_ref[...]                                       # (TN, 1) int32

        # one fused gate matmul for all behaviors: (TN, n_b*n_e)
        g_all = jnp.dot(x_bf, wg_ref[...], preferred_element_type=jnp.float32)

        # behavior-selected mixing coefficients assembled as ONE (TN, n_exp_pad)
        # matrix: shared-expert columns first, then behavior-major specific.
        coeff_sh = jnp.zeros((tn, n_e_sh), jnp.float32)
        coeff_sp = []
        for t in range(n_b):                                 # behavior t -> class t+1
            on_t = (b == (t + 1)).astype(jnp.float32)        # (TN, 1)
            g_t = g_all[:, t * n_e:(t + 1) * n_e]
            g_t = g_t - jnp.max(g_t, axis=-1, keepdims=True)
            e_t = jnp.exp(g_t)
            inv = pl.reciprocal(jnp.sum(e_t, axis=-1, keepdims=True), approx=True)
            gate_t = e_t * inv * on_t                        # softmax, zeroed unless behavior t
            coeff_sh = coeff_sh + gate_t[:, :n_e_sh]
            coeff_sp.append(gate_t[:, n_e_sh:])
        parts = [coeff_sh] + coeff_sp
        if n_exp_pad > n_exp:
            parts.append(jnp.zeros((tn, n_exp_pad - n_exp), jnp.float32))
        coeff = jnp.concatenate(parts, axis=-1)              # (TN, n_exp_pad)

        # expert biases folded in with one small matmul (padded rows are zero)
        selected = jnp.dot(coeff, bexp_ref[...], preferred_element_type=jnp.float32)

        # fused expert matmul, chunked so the live f32 intermediate stays small
        for e0 in range(0, n_exp, exp_chunk):
            c = min(exp_chunk, n_exp - e0)
            w_blk = wexp_ref[...] if c == n_exp else wexp_ref[:, e0 * d:(e0 + c) * d]
            y = jnp.dot(x_bf, w_blk, preferred_element_type=jnp.float32)  # (TN, c*d)
            for e in range(c):
                selected = selected + coeff[:, e0 + e:e0 + e + 1] * y[:, e * d:(e + 1) * d]

        # LayerNorm over the feature dim + residual (class 0 -> LN(0) = beta)
        mean = jnp.mean(selected, axis=-1, keepdims=True)
        cen = selected - mean
        var = jnp.mean(cen * cen, axis=-1, keepdims=True)
        ln = cen * jax.lax.rsqrt(var + ln_eps) * gamma_ref[...] + beta_ref[...]
        h_ref[...] = (x + ln).astype(h_ref.dtype)            # bf16 cache (MXU operand)

    # ---- vocab sweep: lane-dense streaming matmul h @ emb^T -----------------
    logits_ref[...] = jnp.dot(h_ref[...], embt_ref[...],
                              preferred_element_type=jnp.float32
                              ).astype(logits_ref.dtype)


# --------------------------------------------------------------------------
# One-time parameter preparation (run at model init, NOT per forward call)
# --------------------------------------------------------------------------
def prepare_cgc_head_params(params, *, n_b, n_e_sh, n_e_sp):
    """Fuse / transpose / cast parameters into MXU-friendly layouts once."""
    d = params["w_sh"].shape[-1]
    n_e = n_e_sh + n_e_sp
    n_exp = n_e_sh + n_b * n_e_sp
    n_exp_pad = ((n_exp + 7) // 8) * 8

    # experts: nn.Linear stores (out, in); fused as (in, n_exp*out)
    w_all = jnp.concatenate([
        jnp.transpose(params["w_sh"], (2, 0, 1)).reshape(d, n_e_sh * d),
        jnp.transpose(params["w_sp"], (2, 0, 1)).reshape(d, n_b * n_e_sp * d),
    ], axis=1).astype(jnp.bfloat16)                                  # (d, n_exp*d)

    b_all = jnp.concatenate([params["b_sh"], params["b_sp"]],
                            axis=0).astype(jnp.float32)              # (n_exp, d)
    if n_exp_pad > n_exp:
        b_all = jnp.concatenate(
            [b_all, jnp.zeros((n_exp_pad - n_exp, d), jnp.float32)], axis=0)

    wg_all = jnp.transpose(params["w_gates"], (1, 0, 2)).reshape(
        d, n_b * n_e).astype(jnp.bfloat16)                           # (d, n_b*n_e)

    emb_t = params["emb"].T.astype(jnp.bfloat16)                     # (d, V) once, at init
    gamma = params["gamma"].reshape(1, d).astype(jnp.float32)
    beta = params["beta"].reshape(1, d).astype(jnp.float32)
    return {"w_all": w_all, "b_all": b_all, "wg_all": wg_all,
            "emb_t": emb_t, "gamma": gamma, "beta": beta}


# --------------------------------------------------------------------------
# Tiling / VMEM heuristics
# --------------------------------------------------------------------------
def _bytes(shape, dtype):
    return int(np.prod(shape)) * jnp.dtype(dtype).itemsize


def _vmem_budget_bytes():
    """Usable VMEM budget, generation-aware (v7x 64 MiB vs v5e/v6e 128 MiB)."""
    try:
        cap = int(pltpu.get_tpu_info().vmem_capacity_bytes)
    except Exception:
        cap = 64 * 1024 * 1024                       # conservative: v7x per-TC VMEM
    # headroom for Mosaic internal scratch: ~52 MiB on 64 MiB parts, ~108 MiB on 128 MiB
    return min(cap - 12 * 1024 * 1024, int(cap * 0.85))


def _pick_tile_n(N, requested):
    if requested is not None:
        return requested
    cap = 512                                        # multiple of 256 (v6e/v7x MXU) and 128 (v5e)
    if N <= cap:
        tn = N
    else:
        tn = next((c for c in (512, 384, 256, 128, 64, 32, 16, 8) if N % c == 0), N)
    # keep >= 2 iterations on the "parallel" axis so both v7x TensorCores get work
    if N // tn < 2 and N % 2 == 0 and (N // 2) % 8 == 0:
        tn = N // 2
    return tn


def _pick_tile_v(V, requested, *, tile_n, d, out_itemsize, fixed_bytes, budget):
    if requested is not None:
        return requested
    if V % 128 != 0:
        return V                                     # full-extent block (always legal)

    def tile_bytes(tv):                              # double-buffered emb tile + out tile
        return 2 * d * tv * 2 + 2 * tile_n * tv * out_itemsize

    c = min(V, 8192)
    c -= c % 128
    chosen = 128
    while c >= 128:
        if V % c == 0 and fixed_bytes + tile_bytes(c) <= budget:
            chosen = c
            break
        c -= 128
    return chosen


# --------------------------------------------------------------------------
# Forward wrapper
# --------------------------------------------------------------------------
def cgc_head_forward(x, b_seq, prepped, *, n_b, n_e_sh, n_e_sp,
                     tile_n=None, tile_v=None, ln_eps=1e-5,
                     out_dtype=jnp.bfloat16):
    """Full-vocab logits for the CGC head (candidates=None branch).

    `prepped` must come from prepare_cgc_head_params() (done once at init).
    `out_dtype` defaults to bfloat16 to halve the (N, V) HBM writeback; pass
    jnp.float32 if downstream ops need it.
    """
    N, d = x.shape
    V = prepped["emb_t"].shape[1]
    n_e = n_e_sh + n_e_sp
    n_exp = n_e_sh + n_b * n_e_sp
    n_exp_pad = prepped["b_all"].shape[0]
    out_itemsize = jnp.dtype(out_dtype).itemsize

    budget = _vmem_budget_bytes()
    tile_n = _pick_tile_n(N, tile_n)

    # VMEM resident per grid step, excluding the vocab-tile-dependent blocks.
    # Weight blocks counted twice (conservative: as if double-buffered) even
    # though we request single buffering below.
    fixed_bytes = (
        2 * _bytes((tile_n, d), jnp.float32)                 # x
        + 2 * _bytes((tile_n, 1), jnp.int32)                 # b_seq
        + 2 * (_bytes((d, n_exp * d), jnp.bfloat16)          # fused expert weights
               + _bytes((n_exp_pad, d), jnp.float32)         # expert biases
               + _bytes((d, n_b * n_e), jnp.bfloat16)        # fused gate weights
               + 2 * _bytes((1, d), jnp.float32))            # gamma, beta
        + _bytes((tile_n, d), jnp.bfloat16)                  # h scratch
    )
    tile_v = _pick_tile_v(V, tile_v, tile_n=tile_n, d=d,
                          out_itemsize=out_itemsize,
                          fixed_bytes=fixed_bytes, budget=budget)

    assert N % tile_n == 0 and (tile_n == N or tile_n % 8 == 0)
    assert V % tile_v == 0 and (tile_v == V or tile_v % 128 == 0)

    est = (fixed_bytes + 2 * _bytes((d, tile_v), jnp.bfloat16)
           + 2 * _bytes((tile_n, tile_v), out_dtype))
    vmem_limit = int(min(budget, max(int(est * 1.25), 32 * 1024 * 1024)))

    # chunk the fused expert matmul for large d (bounds the live f32 intermediate)
    exp_chunk = n_exp if n_exp * d <= 2048 else max(1, 2048 // d)

    n_tiles_n = N // tile_n
    cost = pl.CostEstimate(
        flops=int(2 * N * d * (n_exp * d + n_b * n_e) + 2 * N * n_exp_pad * d
                  + 2 * N * d * V),
        transcendentals=int(N * n_b * n_e),
        bytes_accessed=int(
            _bytes((N, d), jnp.float32) + _bytes((N, 1), jnp.int32)
            + _bytes((d, n_exp * d), jnp.bfloat16)
            + _bytes((n_exp_pad, d), jnp.float32)
            + _bytes((d, n_b * n_e), jnp.bfloat16)
            + 2 * _bytes((1, d), jnp.float32)
            + n_tiles_n * _bytes((d, V), jnp.bfloat16)       # emb re-streamed per N-tile
            + _bytes((N, V), out_dtype)),
    )

    kernel = functools.partial(_cgc_head_kernel, n_b=n_b, n_e_sh=n_e_sh,
                               n_e_sp=n_e_sp, exp_chunk=exp_chunk, ln_eps=ln_eps)
    args = (x, b_seq.reshape(N, 1).astype(jnp.int32), prepped["w_all"],
            prepped["b_all"], prepped["wg_all"], prepped["gamma"],
            prepped["beta"], prepped["emb_t"])

    def build(weight_mode):
        def wspec(shape):
            nd = len(shape)
            idx = lambda i, j, _nd=nd: (0,) * _nd
            if weight_mode is None:
                return pl.BlockSpec(shape, idx)
            return pl.BlockSpec(shape, idx, pipeline_mode=weight_mode)

        return pl.pallas_call(
            kernel,
            out_shape=jax.ShapeDtypeStruct((N, V), out_dtype),
            grid=(n_tiles_n, V // tile_v),
            in_specs=[
                pl.BlockSpec((tile_n, d), lambda i, j: (i, 0)),    # x (f32)
                pl.BlockSpec((tile_n, 1), lambda i, j: (i, 0)),    # b_seq (int32)
                wspec((d, n_exp * d)),                             # fused expert weights (bf16)
                wspec((n_exp_pad, d)),                             # expert biases (f32, padded)
                wspec((d, n_b * n_e)),                             # fused gate weights (bf16)
                wspec((1, d)),                                     # ln gamma
                wspec((1, d)),                                     # ln beta
                pl.BlockSpec((d, tile_v), lambda i, j: (0, j)),    # embeddings^T (bf16), V-tiled
            ],
            out_specs=pl.BlockSpec((tile_n, tile_v), lambda i, j: (i, j)),
            scratch_shapes=[pltpu.VMEM((tile_n, d), jnp.bfloat16)],  # h, cached per N-tile
            compiler_params=pltpu.CompilerParams(
                dimension_semantics=("parallel", "arbitrary"),
                vmem_limit_bytes=vmem_limit),
            cost_estimate=cost,
        )

    try:
        # Grid-invariant weight blocks don't need double buffering; freeing the
        # second copy matters on v7x's 64 MiB VMEM (buys bigger vocab tiles).
        return build(pl.Buffered(1))(*args)
    except Exception:
        # Older / other JAX builds: fall back to default (double-buffered) blocks.
        return build(None)(*args)


# --------------------------------------------------------------------------
# Pure-JAX reference (mirrors the PyTorch forward with candidates=None, f32)
# --------------------------------------------------------------------------
def cgc_head_reference(x, b_seq, params, *, n_b, n_e_sh, n_e_sp):
    shared_o = [x @ params["w_sh"][e].T + params["b_sh"][e] for e in range(n_e_sh)]
    specific_o = [x @ params["w_sp"][e].T + params["b_sp"][e]
                  for e in range(n_b * n_e_sp)]
    gates = jax.nn.softmax(jnp.einsum("nd,tde->tne", x, params["w_gates"]), axis=-1)
    experts = jnp.stack([jnp.stack(shared_o + specific_o[i * n_e_sp:(i + 1) * n_e_sp])
                         for i in range(n_b)])                     # (n_b, n_e, N, d)
    output = jnp.einsum("tend,tne->tnd", experts, gates)           # (n_b, N, d)
    outputs = jnp.concatenate([jnp.zeros_like(x)[None], output], axis=0)
    oh = jax.nn.one_hot(b_seq, n_b + 1, dtype=jnp.float32)
    sel = jnp.einsum("tnd,nt->nd", outputs, oh)
    mean = sel.mean(-1, keepdims=True)
    var = ((sel - mean) ** 2).mean(-1, keepdims=True)
    ln = (sel - mean) * jax.lax.rsqrt(var + 1e-5) * params["gamma"] + params["beta"]
    h = x + ln
    return h @ params["emb"].T


# --------------------------------------------------------------------------
if __name__ == "__main__":
    # Small shapes consistent with the module's forward
    d_model, n_b, n_e_sh, n_e_sp = 32, 2, 3, 1
    num_items = 511
    vocab_size = num_items + 1          # 512
    N = 16                              # flattened tokens

    key = jax.random.PRNGKey(0)
    ks = jax.random.split(key, 10)

    params = {
        "w_sh": 0.1 * jax.random.normal(ks[0], (n_e_sh, d_model, d_model), jnp.float32),
        "b_sh": 0.1 * jax.random.normal(ks[1], (n_e_sh, d_model), jnp.float32),
        "w_sp": 0.1 * jax.random.normal(ks[2], (n_b * n_e_sp, d_model, d_model), jnp.float32),
        "b_sp": 0.1 * jax.random.normal(ks[3], (n_b * n_e_sp, d_model), jnp.float32),
        "w_gates": jax.random.normal(ks[4], (n_b, d_model, n_e_sh + n_e_sp), jnp.float32),
        "gamma": 1.0 + 0.1 * jax.random.normal(ks[5], (d_model,), jnp.float32),
        "beta": 0.1 * jax.random.normal(ks[6], (d_model,), jnp.float32),
        "emb": 0.05 * jax.random.normal(ks[7], (vocab_size, d_model), jnp.float32),
    }
    x = jax.random.normal(ks[8], (N, d_model), jnp.float32)
    b_seq = jax.random.randint(ks[9], (N,), 0, n_b + 1, jnp.int32)

    # one-time layout prep (model init), then the hot-path call
    prepped = prepare_cgc_head_params(params, n_b=n_b, n_e_sh=n_e_sh, n_e_sp=n_e_sp)
    logits = cgc_head_forward(x, b_seq, prepped, n_b=n_b, n_e_sh=n_e_sh, n_e_sp=n_e_sp)
    logits = jax.block_until_ready(logits)

    ref = cgc_head_reference(x, b_seq, params, n_b=n_b, n_e_sh=n_e_sh, n_e_sp=n_e_sp)
    # bf16 MXU operands / bf16 output with f32 accumulation -> ~1e-2 rel error expected
    np.testing.assert_allclose(np.asarray(logits.astype(jnp.float32)),
                               np.asarray(ref), rtol=3e-2, atol=3e-2)

    print("KERNEL_OK")
</pallas_src>

<mosaic_0001>
module attributes {stable_mosaic.version = 11 : i64} {
  func.func @_cgc_head_kernel(%arg0: i32, %arg1: i32, %arg2: memref<8x32xf32, #tpu.memory_space<vmem>>, %arg3: memref<8x1xi32, #tpu.memory_space<vmem>>, %arg4: memref<32x160xbf16, #tpu.memory_space<vmem>>, %arg5: memref<8x32xf32, #tpu.memory_space<vmem>>, %arg6: memref<32x8xbf16, #tpu.memory_space<vmem>>, %arg7: memref<1x32xf32, #tpu.memory_space<vmem>>, %arg8: memref<1x32xf32, #tpu.memory_space<vmem>>, %arg9: memref<32x512xbf16, #tpu.memory_space<vmem>>, %arg10: memref<8x512xbf16, #tpu.memory_space<vmem>>, %arg11: memref<8x32xbf16, #tpu.memory_space<vmem>>) attributes {dimension_semantics = [#tpu.dimension_semantics<parallel>, #tpu.dimension_semantics<arbitrary>], iteration_bounds = array<i64: 2, 1>, scalar_prefetch = 0 : i64, scratch_operands = 1 : i64, tpu.core_type = #tpu.core_type<tc>, window_params = [{transform_indices = @transform_0, window_bounds = array<i64: 8, 32>}, {transform_indices = @transform_1, window_bounds = array<i64: 8, 1>}, {pipeline_mode = #tpu.pipeline_mode<synchronous>, transform_indices = @transform_2, window_bounds = array<i64: 32, 160>}, {pipeline_mode = #tpu.pipeline_mode<synchronous>, transform_indices = @transform_3, window_bounds = array<i64: 8, 32>}, {pipeline_mode = #tpu.pipeline_mode<synchronous>, transform_indices = @transform_4, window_bounds = array<i64: 32, 8>}, {pipeline_mode = #tpu.pipeline_mode<synchronous>, transform_indices = @transform_5, window_bounds = array<i64: 1, 32>}, {pipeline_mode = #tpu.pipeline_mode<synchronous>, transform_indices = @transform_6, window_bounds = array<i64: 1, 32>}, {transform_indices = @transform_7, window_bounds = array<i64: 32, 512>}, {transform_indices = @transform_8, window_bounds = array<i64: 8, 512>}]} {
    %c0_i32 = arith.constant 0 : i32
    %0 = arith.cmpi eq, %arg1, %c0_i32 : i32
    %1 = arith.extui %0 : i1 to i32
    %c0_i32_0 = arith.constant 0 : i32
    %2 = arith.cmpi ne, %1, %c0_i32_0 : i32
    scf.if %2 {
      %c0_6 = arith.constant 0 : index
      %c0_7 = arith.constant 0 : index
      %8 = vector.load %arg2[%c0_6, %c0_7] : memref<8x32xf32, #tpu.memory_space<vmem>>, vector<8x32xf32>
      %9 = arith.truncf %8 : vector<8x32xf32> to vector<8x32xbf16>
      %c0_8 = arith.constant 0 : index
      %c0_9 = arith.constant 0 : index
      %10 = vector.load %arg3[%c0_8, %c0_9] : memref<8x1xi32, #tpu.memory_space<vmem>>, vector<8x1xi32>
      %c0_10 = arith.constant 0 : index
      %c0_11 = arith.constant 0 : index
      %11 = vector.load %arg6[%c0_10, %c0_11] : memref<32x8xbf16, #tpu.memory_space<vmem>>, vector<32x8xbf16>
      %cst_12 = arith.constant dense<0.000000e+00> : vector<8x8xf32>
      %12 = tpu.matmul %9, %11, %cst_12 {dimension_numbers = #tpu.dot_dimension_numbers<[1], [0], [0], [1], [0, 0, 1, 1], [], []>} : vector<8x32xbf16>, vector<32x8xbf16>, vector<8x8xf32> -> vector<8x8xf32>
      %cst_13 = arith.constant 0.000000e+00 : f32
      %13 = vector.broadcast %cst_13 : f32 to vector<8x3xf32>
      %c1_i32 = arith.constant 1 : i32
      %14 = vector.broadcast %c1_i32 : i32 to vector<8x1xi32>
      %15 = arith.cmpi eq, %10, %14 : vector<8x1xi32>
      %16 = arith.extui %15 : vector<8x1xi1> to vector<8x1xi32>
      %17 = arith.sitofp %16 : vector<8x1xi32> to vector<8x1xf32>
      %18 = vector.extract_strided_slice %12 {offsets = [0, 0], sizes = [8, 4], strides = [1, 1]} : vector<8x8xf32> to vector<8x4xf32>
      %cst_14 = arith.constant dense<0xFF800000> : vector<8xf32>
      %19 = vector.multi_reduction <maximumf>, %18, %cst_14 [1] : vector<8x4xf32> to vector<8xf32>
      %20 = vector.shape_cast %19 : vector<8xf32> to vector<8x1xf32>
      %21 = vector.broadcast %20 : vector<8x1xf32> to vector<8x4xf32>
      %22 = arith.subf %18, %21 : vector<8x4xf32>
      %23 = math.exp %22 : vector<8x4xf32>
      %cst_15 = arith.constant dense<0.000000e+00> : vector<8xf32>
      %24 = vector.multi_reduction <add>, %23, %cst_15 [1] : vector<8x4xf32> to vector<8xf32>
      %25 = vector.shape_cast %24 : vector<8xf32> to vector<8x1xf32>
      %26 = tpu.reciprocal %25 {approx = true} : vector<8x1xf32> -> vector<8x1xf32>
      %27 = vector.broadcast %26 : vector<8x1xf32> to vector<8x4xf32>
      %28 = arith.mulf %23, %27 : vector<8x4xf32>
      %29 = vector.broadcast %17 : vector<8x1xf32> to vector<8x4xf32>
      %30 = arith.mulf %28, %29 : vector<8x4xf32>
      %31 = vector.extract_strided_slice %30 {offsets = [0, 0], sizes = [8, 3], strides = [1, 1]} : vector<8x4xf32> to vector<8x3xf32>
      %32 = arith.addf %13, %31 : vector<8x3xf32>
      %33 = vector.extract_strided_slice %30 {offsets = [0, 3], sizes = [8, 1], strides = [1, 1]} : vector<8x4xf32> to vector<8x1xf32>
      %c2_i32 = arith.constant 2 : i32
      %34 = vector.broadcast %c2_i32 : i32 to vector<8x1xi32>
      %35 = arith.cmpi eq, %10, %34 : vector<8x1xi32>
      %36 = arith.extui %35 : vector<8x1xi1> to vector<8x1xi32>
      %37 = arith.sitofp %36 : vector<8x1xi32> to vector<8x1xf32>
      %38 = vector.extract_strided_slice %12 {offsets = [0, 4], sizes = [8, 4], strides = [1, 1]} : vector<8x8xf32> to vector<8x4xf32>
      %cst_16 = arith.constant dense<0xFF800000> : vector<8xf32>
      %39 = vector.multi_reduction <maximumf>, %38, %cst_16 [1] : vector<8x4xf32> to vector<8xf32>
      %40 = vector.shape_cast %39 : vector<8xf32> to vector<8x1xf32>
      %41 = vector.broadcast %40 : vector<8x1xf32> to vector<8x4xf32>
      %42 = arith.subf %38, %41 : vector<8x4xf32>
      %43 = math.exp %42 : vector<8x4xf32>
      %cst_17 = arith.constant dense<0.000000e+00> : vector<8xf32>
      %44 = vector.multi_reduction <add>, %43, %cst_17 [1] : vector<8x4xf32> to vector<8xf32>
      %45 = vector.shape_cast %44 : vector<8xf32> to vector<8x1xf32>
      %46 = tpu.reciprocal %45 {approx = true} : vector<8x1xf32> -> vector<8x1xf32>
      %47 = vector.broadcast %46 : vector<8x1xf32> to vector<8x4xf32>
      %48 = arith.mulf %43, %47 : vector<8x4xf32>
      %49 = vector.broadcast %37 : vector<8x1xf32> to vector<8x4xf32>
      %50 = arith.mulf %48, %49 : vector<8x4xf32>
      %51 = vector.extract_strided_slice %50 {offsets = [0, 0], sizes = [8, 3], strides = [1, 1]} : vector<8x4xf32> to vector<8x3xf32>
      %52 = arith.addf %32, %51 : vector<8x3xf32>
      %53 = vector.extract_strided_slice %50 {offsets = [0, 3], sizes = [8, 1], strides = [1, 1]} : vector<8x4xf32> to vector<8x1xf32>
      %cst_18 = arith.constant 0.000000e+00 : f32
      %54 = vector.broadcast %cst_18 : f32 to vector<8x3xf32>
      %55 = tpu.concatenate %52, %33, %53, %54 in 1 : vector<8x3xf32>, vector<8x1xf32>, vector<8x1xf32>, vector<8x3xf32> -> vector<8x8xf32>
      %c0_19 = arith.constant 0 : index
      %c0_20 = arith.constant 0 : index
      %56 = vector.load %arg5[%c0_19, %c0_20] : memref<8x32xf32, #tpu.memory_space<vmem>>, vector<8x32xf32>
      %cst_21 = arith.constant dense<0.000000e+00> : vector<8x32xf32>
      %57 = tpu.matmul %55, %56, %cst_21 {dimension_numbers = #tpu.dot_dimension_numbers<[1], [0], [0], [1], [0, 0, 1, 1], [], []>} : vector<8x8xf32>, vector<8x32xf32>, vector<8x32xf32> -> vector<8x32xf32>
      %c0_22 = arith.constant 0 : index
      %c0_23 = arith.constant 0 : index
      %58 = vector.load %arg4[%c0_22, %c0_23] : memref<32x160xbf16, #tpu.memory_space<vmem>>, vector<32x160xbf16>
      %cst_24 = arith.constant dense<0.000000e+00> : vector<8x160xf32>
      %59 = tpu.matmul %9, %58, %cst_24 {dimension_numbers = #tpu.dot_dimension_numbers<[1], [0], [0], [1], [0, 0, 1, 1], [], []>} : vector<8x32xbf16>, vector<32x160xbf16>, vector<8x160xf32> -> vector<8x160xf32>
      %60 = vector.extract_strided_slice %55 {offsets = [0, 0], sizes = [8, 1], strides = [1, 1]} : vector<8x8xf32> to vector<8x1xf32>
      %61 = vector.extract_strided_slice %59 {offsets = [0, 0], sizes = [8, 32], strides = [1, 1]} : vector<8x160xf32> to vector<8x32xf32>
      %62 = vector.broadcast %60 : vector<8x1xf32> to vector<8x32xf32>
      %63 = arith.mulf %62, %61 : vector<8x32xf32>
      %64 = arith.addf %57, %63 : vector<8x32xf32>
      %65 = vector.extract_strided_slice %55 {offsets = [0, 1], sizes = [8, 1], strides = [1, 1]} : vector<8x8xf32> to vector<8x1xf32>
      %66 = vector.extract_strided_slice %59 {offsets = [0, 32], sizes = [8, 32], strides = [1, 1]} : vector<8x160xf32> to vector<8x32xf32>
      %67 = vector.broadcast %65 : vector<8x1xf32> to vector<8x32xf32>
      %68 = arith.mulf %67, %66 : vector<8x32xf32>
      %69 = arith.addf %64, %68 : vector<8x32xf32>
      %70 = vector.extract_strided_slice %55 {offsets = [0, 2], sizes = [8, 1], strides = [1, 1]} : vector<8x8xf32> to vector<8x1xf32>
      %71 = vector.extract_strided_slice %59 {offsets = [0, 64], sizes = [8, 32], strides = [1, 1]} : vector<8x160xf32> to vector<8x32xf32>
      %72 = vector.broadcast %70 : vector<8x1xf32> to vector<8x32xf32>
      %73 = arith.mulf %72, %71 : vector<8x32xf32>
      %74 = arith.addf %69, %73 : vector<8x32xf32>
      %75 = vector.extract_strided_slice %55 {offsets = [0, 3], sizes = [8, 1], strides = [1, 1]} : vector<8x8xf32> to vector<8x1xf32>
      %76 = vector.extract_strided_slice %59 {offsets = [0, 96], sizes = [8, 32], strides = [1, 1]} : vector<8x160xf32> to vector<8x32xf32>
      %77 = vector.broadcast %75 : vector<8x1xf32> to vector<8x32xf32>
      %78 = arith.mulf %77, %76 : vector<8x32xf32>
      %79 = arith.addf %74, %78 : vector<8x32xf32>
      %80 = vector.extract_strided_slice %55 {offsets = [0, 4], sizes = [8, 1], strides = [1, 1]} : vector<8x8xf32> to vector<8x1xf32>
      %81 = vector.extract_strided_slice %59 {offsets = [0, 128], sizes = [8, 32], strides = [1, 1]} : vector<8x160xf32> to vector<8x32xf32>
      %82 = vector.broadcast %80 : vector<8x1xf32> to vector<8x32xf32>
      %83 = arith.mulf %82, %81 : vector<8x32xf32>
      %84 = arith.addf %79, %83 : vector<8x32xf32>
      %cst_25 = arith.constant dense<0.000000e+00> : vector<8xf32>
      %85 = vector.multi_reduction <add>, %84, %cst_25 [1] : vector<8x32xf32> to vector<8xf32>
      %86 = vector.shape_cast %85 : vector<8xf32> to vector<8x1xf32>
      %cst_26 = arith.constant 3.200000e+01 : f32
      %87 = vector.broadcast %cst_26 : f32 to vector<8x1xf32>
      %88 = arith.divf %86, %87 : vector<8x1xf32>
      %89 = vector.broadcast %88 : vector<8x1xf32> to vector<8x32xf32>
      %90 = arith.subf %84, %89 : vector<8x32xf32>
      %91 = arith.mulf %90, %90 : vector<8x32xf32>
      %cst_27 = arith.constant dense<0.000000e+00> : vector<8xf32>
      %92 = vector.multi_reduction <add>, %91, %cst_27 [1] : vector<8x32xf32> to vector<8xf32>
      %93 = vector.shape_cast %92 : vector<8xf32> to vector<8x1xf32>
      %cst_28 = arith.constant 3.200000e+01 : f32
      %94 = vector.broadcast %cst_28 : f32 to vector<8x1xf32>
      %95 = arith.divf %93, %94 : vector<8x1xf32>
      %cst_29 = arith.constant 9.99999974E-6 : f32
      %96 = vector.broadcast %cst_29 : f32 to vector<8x1xf32>
      %97 = arith.addf %95, %96 : vector<8x1xf32>
      %98 = math.rsqrt %97 : vector<8x1xf32>
      %99 = vector.broadcast %98 : vector<8x1xf32> to vector<8x32xf32>
      %100 = arith.mulf %90, %99 : vector<8x32xf32>
      %c0_30 = arith.constant 0 : index
      %c0_31 = arith.constant 0 : index
      %101 = vector.load %arg7[%c0_30, %c0_31] : memref<1x32xf32, #tpu.memory_space<vmem>>, vector<1x32xf32>
      %102 = vector.broadcast %101 : vector<1x32xf32> to vector<8x32xf32>
      %103 = arith.mulf %100, %102 : vector<8x32xf32>
      %c0_32 = arith.constant 0 : index
      %c0_33 = arith.constant 0 : index
      %104 = vector.load %arg8[%c0_32, %c0_33] : memref<1x32xf32, #tpu.memory_space<vmem>>, vector<1x32xf32>
      %105 = vector.broadcast %104 : vector<1x32xf32> to vector<8x32xf32>
      %106 = arith.addf %103, %105 : vector<8x32xf32>
      %107 = arith.addf %8, %106 : vector<8x32xf32>
      %108 = arith.truncf %107 : vector<8x32xf32> to vector<8x32xbf16>
      %c0_34 = arith.constant 0 : index
      %c0_35 = arith.constant 0 : index
      %109 = vector.load %arg11[%c0_34, %c0_35] : memref<8x32xbf16, #tpu.memory_space<vmem>>, vector<8x32xbf16>
      tpu.vector_store %arg11[%c0_34, %c0_35], %108 {strides = array<i32>} : memref<8x32xbf16, #tpu.memory_space<vmem>>, vector<8x32xbf16>,
    } else {
    }
    %c0 = arith.constant 0 : index
    %c0_1 = arith.constant 0 : index
    %3 = vector.load %arg11[%c0, %c0_1] : memref<8x32xbf16, #tpu.memory_space<vmem>>, vector<8x32xbf16>
    %c0_2 = arith.constant 0 : index
    %c0_3 = arith.constant 0 : index
    %4 = vector.load %arg9[%c0_2, %c0_3] : memref<32x512xbf16, #tpu.memory_space<vmem>>, vector<32x512xbf16>
    %cst = arith.constant dense<0.000000e+00> : vector<8x512xf32>
    %5 = tpu.matmul %3, %4, %cst {dimension_numbers = #tpu.dot_dimension_numbers<[1], [0], [0], [1], [0, 0, 1, 1], [], []>} : vector<8x32xbf16>, vector<32x512xbf16>, vector<8x512xf32> -> vector<8x512xf32>
    %6 = arith.truncf %5 : vector<8x512xf32> to vector<8x512xbf16>
    %c0_4 = arith.constant 0 : index
    %c0_5 = arith.constant 0 : index
    %7 = vector.load %arg10[%c0_4, %c0_5] : memref<8x512xbf16, #tpu.memory_space<vmem>>, vector<8x512xbf16>
    tpu.vector_store %arg10[%c0_4, %c0_5], %6 {strides = array<i32>} : memref<8x512xbf16, #tpu.memory_space<vmem>>, vector<8x512xbf16>,
    return
  }
  func.func @transform_0(%arg0: i32, %arg1: i32) -> (i32, i32) {
    %c0_i32 = arith.constant 0 : i32
    %c0_i32_0 = arith.constant 0 : i32
    return %arg0, %c0_i32 : i32, i32
  }
  func.func @transform_1(%arg0: i32, %arg1: i32) -> (i32, i32) {
    %c0_i32 = arith.constant 0 : i32
    %c0_i32_0 = arith.constant 0 : i32
    return %arg0, %c0_i32 : i32, i32
  }
  func.func @transform_2(%arg0: i32, %arg1: i32) -> (i32, i32) {
    %c0_i32 = arith.constant 0 : i32
    %c0_i32_0 = arith.constant 0 : i32
    %c0_i32_1 = arith.constant 0 : i32
    return %c0_i32, %c0_i32_0 : i32, i32
  }
  func.func @transform_3(%arg0: i32, %arg1: i32) -> (i32, i32) {
    %c0_i32 = arith.constant 0 : i32
    %c0_i32_0 = arith.constant 0 : i32
    %c0_i32_1 = arith.constant 0 : i32
    return %c0_i32, %c0_i32_0 : i32, i32
  }
  func.func @transform_4(%arg0: i32, %arg1: i32) -> (i32, i32) {
    %c0_i32 = arith.constant 0 : i32
    %c0_i32_0 = arith.constant 0 : i32
    %c0_i32_1 = arith.constant 0 : i32
    return %c0_i32, %c0_i32_0 : i32, i32
  }
  func.func @transform_5(%arg0: i32, %arg1: i32) -> (i32, i32) {
    %c0_i32 = arith.constant 0 : i32
    %c0_i32_0 = arith.constant 0 : i32
    %c0_i32_1 = arith.constant 0 : i32
    return %c0_i32, %c0_i32_0 : i32, i32
  }
  func.func @transform_6(%arg0: i32, %arg1: i32) -> (i32, i32) {
    %c0_i32 = arith.constant 0 : i32
    %c0_i32_0 = arith.constant 0 : i32
    %c0_i32_1 = arith.constant 0 : i32
    return %c0_i32, %c0_i32_0 : i32, i32
  }
  func.func @transform_7(%arg0: i32, %arg1: i32) -> (i32, i32) {
    %c0_i32 = arith.constant 0 : i32
    %c0_i32_0 = arith.constant 0 : i32
    return %c0_i32, %arg1 : i32, i32
  }
  func.func @transform_8(%arg0: i32, %arg1: i32) -> (i32, i32) {
    %c0_i32 = arith.constant 0 : i32
    return %arg0, %arg1 : i32, i32
  }
}

module attributes {stable_mosaic.version = 11 : i64} {
  func.func @_cgc_head_kernel(%arg0: i32, %arg1: i32, %arg2: memref<8x32xf32, #tpu.memory_space<vmem>>, %arg3: memref<8x1xi32, #tpu.memory_space<vmem>>, %arg4: memref<32x160xbf16, #tpu.memory_space<vmem>>, %arg5: memref<8x32xf32, #tpu.memory_space<vmem>>, %arg6: memref<32x8xbf16, #tpu.memory_space<vmem>>, %arg7: memref<1x32xf32, #tpu.memory_space<vmem>>, %arg8: memref<1x32xf32, #tpu.memory_space<vmem>>, %arg9: memref<32x512xbf16, #tpu.memory_space<vmem>>, %arg10: memref<8x512xbf16, #tpu.memory_space<vmem>>, %arg11: memref<8x32xbf16, #tpu.memory_space<vmem>>) attributes {dimension_semantics = [#tpu.dimension_semantics<parallel>, #tpu.dimension_semantics<arbitrary>], iteration_bounds = array<i64: 2, 1>, scalar_prefetch = 0 : i64, scratch_operands = 1 : i64, tpu.core_type = #tpu.core_type<tc>, window_params = [{transform_indices = @transform_0, window_bounds = array<i64: 8, 32>}, {transform_indices = @transform_1, window_bounds = array<i64: 8, 1>}, {pipeline_mode = #tpu.pipeline_mode<synchronous>, transform_indices = @transform_2, window_bounds = array<i64: 32, 160>}, {pipeline_mode = #tpu.pipeline_mode<synchronous>, transform_indices = @transform_3, window_bounds = array<i64: 8, 32>}, {pipeline_mode = #tpu.pipeline_mode<synchronous>, transform_indices = @transform_4, window_bounds = array<i64: 32, 8>}, {pipeline_mode = #tpu.pipeline_mode<synchronous>, transform_indices = @transform_5, window_bounds = array<i64: 1, 32>}, {pipeline_mode = #tpu.pipeline_mode<synchronous>, transform_indices = @transform_6, window_bounds = array<i64: 1, 32>}, {transform_indices = @transform_7, window_bounds = array<i64: 32, 512>}, {transform_indices = @transform_8, window_bounds = array<i64: 8, 512>}]} {
    %c0_i32 = arith.constant 0 : i32
    %0 = arith.cmpi eq, %arg1, %c0_i32 : i32
    %1 = arith.extui %0 : i1 to i32
    %c0_i32_0 = arith.constant 0 : i32
    %2 = arith.cmpi ne, %1, %c0_i32_0 : i32
    scf.if %2 {
      %c0_6 = arith.constant 0 : index
      %c0_7 = arith.constant 0 : index
      %8 = vector.load %arg2[%c0_6, %c0_7] : memref<8x32xf32, #tpu.memory_space<vmem>>, vector<8x32xf32>
      %9 = arith.truncf %8 : vector<8x32xf32> to vector<8x32xbf16>
      %c0_8 = arith.constant 0 : index
      %c0_9 = arith.constant 0 : index
      %10 = vector.load %arg3[%c0_8, %c0_9] : memref<8x1xi32, #tpu.memory_space<vmem>>, vector<8x1xi32>
      %c0_10 = arith.constant 0 : index
      %c0_11 = arith.constant 0 : index
      %11 = vector.load %arg6[%c0_10, %c0_11] : memref<32x8xbf16, #tpu.memory_space<vmem>>, vector<32x8xbf16>
      %cst_12 = arith.constant dense<0.000000e+00> : vector<8x8xf32>
      %12 = tpu.matmul %9, %11, %cst_12 {dimension_numbers = #tpu.dot_dimension_numbers<[1], [0], [0], [1], [0, 0, 1, 1], [], []>} : vector<8x32xbf16>, vector<32x8xbf16>, vector<8x8xf32> -> vector<8x8xf32>
      %cst_13 = arith.constant 0.000000e+00 : f32
      %13 = vector.broadcast %cst_13 : f32 to vector<8x3xf32>
      %c1_i32 = arith.constant 1 : i32
      %14 = vector.broadcast %c1_i32 : i32 to vector<8x1xi32>
      %15 = arith.cmpi eq, %10, %14 : vector<8x1xi32>
      %16 = arith.extui %15 : vector<8x1xi1> to vector<8x1xi32>
      %17 = arith.sitofp %16 : vector<8x1xi32> to vector<8x1xf32>
      %18 = vector.extract_strided_slice %12 {offsets = [0, 0], sizes = [8, 4], strides = [1, 1]} : vector<8x8xf32> to vector<8x4xf32>
      %cst_14 = arith.constant dense<0xFF800000> : vector<8xf32>
      %19 = vector.multi_reduction <maximumf>, %18, %cst_14 [1] : vector<8x4xf32> to vector<8xf32>
      %20 = vector.shape_cast %19 : vector<8xf32> to vector<8x1xf32>
      %21 = vector.broadcast %20 : vector<8x1xf32> to vector<8x4xf32>
      %22 = arith.subf %18, %21 : vector<8x4xf32>
      %23 = math.exp %22 : vector<8x4xf32>
      %cst_15 = arith.constant dense<0.000000e+00> : vector<8xf32>
      %24 = vector.multi_reduction <add>, %23, %cst_15 [1] : vector<8x4xf32> to vector<8xf32>
      %25 = vector.shape_cast %24 : vector<8xf32> to vector<8x1xf32>
      %26 = tpu.reciprocal %25 {approx = true} : vector<8x1xf32> -> vector<8x1xf32>
      %27 = vector.broadcast %26 : vector<8x1xf32> to vector<8x4xf32>
      %28 = arith.mulf %23, %27 : vector<8x4xf32>
      %29 = vector.broadcast %17 : vector<8x1xf32> to vector<8x4xf32>
      %30 = arith.mulf %28, %29 : vector<8x4xf32>
      %31 = vector.extract_strided_slice %30 {offsets = [0, 0], sizes = [8, 3], strides = [1, 1]} : vector<8x4xf32> to vector<8x3xf32>
      %32 = arith.addf %13, %31 : vector<8x3xf32>
      %33 = vector.extract_strided_slice %30 {offsets = [0, 3], sizes = [8, 1], strides = [1, 1]} : vector<8x4xf32> to vector<8x1xf32>
      %c2_i32 = arith.constant 2 : i32
      %34 = vector.broadcast %c2_i32 : i32 to vector<8x1xi32>
      %35 = arith.cmpi eq, %10, %34 : vector<8x1xi32>
      %36 = arith.extui %35 : vector<8x1xi1> to vector<8x1xi32>
      %37 = arith.sitofp %36 : vector<8x1xi32> to vector<8x1xf32>
      %38 = vector.extract_strided_slice %12 {offsets = [0, 4], sizes = [8, 4], strides = [1, 1]} : vector<8x8xf32> to vector<8x4xf32>
      %cst_16 = arith.constant dense<0xFF800000> : vector<8xf32>
      %39 = vector.multi_reduction <maximumf>, %38, %cst_16 [1] : vector<8x4xf32> to vector<8xf32>
      %40 = vector.shape_cast %39 : vector<8xf32> to vector<8x1xf32>
      %41 = vector.broadcast %40 : vector<8x1xf32> to vector<8x4xf32>
      %42 = arith.subf %38, %41 : vector<8x4xf32>
      %43 = math.exp %42 : vector<8x4xf32>
      %cst_17 = arith.constant dense<0.000000e+00> : vector<8xf32>
      %44 = vector.multi_reduction <add>, %43, %cst_17 [1] : vector<8x4xf32> to vector<8xf32>
      %45 = vector.shape_cast %44 : vector<8xf32> to vector<8x1xf32>
      %46 = tpu.reciprocal %45 {approx = true} : vector<8x1xf32> -> vector<8x1xf32>
      %47 = vector.broadcast %46 : vector<8x1xf32> to vector<8x4xf32>
      %48 = arith.mulf %43, %47 : vector<8x4xf32>
      %49 = vector.broadcast %37 : vector<8x1xf32> to vector<8x4xf32>
      %50 = arith.mulf %48, %49 : vector<8x4xf32>
      %51 = vector.extract_strided_slice %50 {offsets = [0, 0], sizes = [8, 3], strides = [1, 1]} : vector<8x4xf32> to vector<8x3xf32>
      %52 = arith.addf %32, %51 : vector<8x3xf32>
      %53 = vector.extract_strided_slice %50 {offsets = [0, 3], sizes = [8, 1], strides = [1, 1]} : vector<8x4xf32> to vector<8x1xf32>
      %cst_18 = arith.constant 0.000000e+00 : f32
      %54 = vector.broadcast %cst_18 : f32 to vector<8x3xf32>
      %55 = tpu.concatenate %52, %33, %53, %54 in 1 : vector<8x3xf32>, vector<8x1xf32>, vector<8x1xf32>, vector<8x3xf32> -> vector<8x8xf32>
      %c0_19 = arith.constant 0 : index
      %c0_20 = arith.constant 0 : index
      %56 = vector.load %arg5[%c0_19, %c0_20] : memref<8x32xf32, #tpu.memory_space<vmem>>, vector<8x32xf32>
      %cst_21 = arith.constant dense<0.000000e+00> : vector<8x32xf32>
      %57 = tpu.matmul %55, %56, %cst_21 {dimension_numbers = #tpu.dot_dimension_numbers<[1], [0], [0], [1], [0, 0, 1, 1], [], []>} : vector<8x8xf32>, vector<8x32xf32>, vector<8x32xf32> -> vector<8x32xf32>
      %c0_22 = arith.constant 0 : index
      %c0_23 = arith.constant 0 : index
      %58 = vector.load %arg4[%c0_22, %c0_23] : memref<32x160xbf16, #tpu.memory_space<vmem>>, vector<32x160xbf16>
      %cst_24 = arith.constant dense<0.000000e+00> : vector<8x160xf32>
      %59 = tpu.matmul %9, %58, %cst_24 {dimension_numbers = #tpu.dot_dimension_numbers<[1], [0], [0], [1], [0, 0, 1, 1], [], []>} : vector<8x32xbf16>, vector<32x160xbf16>, vector<8x160xf32> -> vector<8x160xf32>
      %60 = vector.extract_strided_slice %55 {offsets = [0, 0], sizes = [8, 1], strides = [1, 1]} : vector<8x8xf32> to vector<8x1xf32>
      %61 = vector.extract_strided_slice %59 {offsets = [0, 0], sizes = [8, 32], strides = [1, 1]} : vector<8x160xf32> to vector<8x32xf32>
      %62 = vector.broadcast %60 : vector<8x1xf32> to vector<8x32xf32>
      %63 = arith.mulf %62, %61 : vector<8x32xf32>
      %64 = arith.addf %57, %63 : vector<8x32xf32>
      %65 = vector.extract_strided_slice %55 {offsets = [0, 1], sizes = [8, 1], strides = [1, 1]} : vector<8x8xf32> to vector<8x1xf32>
      %66 = vector.extract_strided_slice %59 {offsets = [0, 32], sizes = [8, 32], strides = [1, 1]} : vector<8x160xf32> to vector<8x32xf32>
      %67 = vector.broadcast %65 : vector<8x1xf32> to vector<8x32xf32>
      %68 = arith.mulf %67, %66 : vector<8x32xf32>
      %69 = arith.addf %64, %68 : vector<8x32xf32>
      %70 = vector.extract_strided_slice %55 {offsets = [0, 2], sizes = [8, 1], strides = [1, 1]} : vector<8x8xf32> to vector<8x1xf32>
      %71 = vector.extract_strided_slice %59 {offsets = [0, 64], sizes = [8, 32], strides = [1, 1]} : vector<8x160xf32> to vector<8x32xf32>
      %72 = vector.broadcast %70 : vector<8x1xf32> to vector<8x32xf32>
      %73 = arith.mulf %72, %71 : vector<8x32xf32>
      %74 = arith.addf %69, %73 : vector<8x32xf32>
      %75 = vector.extract_strided_slice %55 {offsets = [0, 3], sizes = [8, 1], strides = [1, 1]} : vector<8x8xf32> to vector<8x1xf32>
      %76 = vector.extract_strided_slice %59 {offsets = [0, 96], sizes = [8, 32], strides = [1, 1]} : vector<8x160xf32> to vector<8x32xf32>
      %77 = vector.broadcast %75 : vector<8x1xf32> to vector<8x32xf32>
      %78 = arith.mulf %77, %76 : vector<8x32xf32>
      %79 = arith.addf %74, %78 : vector<8x32xf32>
      %80 = vector.extract_strided_slice %55 {offsets = [0, 4], sizes = [8, 1], strides = [1, 1]} : vector<8x8xf32> to vector<8x1xf32>
      %81 = vector.extract_strided_slice %59 {offsets = [0, 128], sizes = [8, 32], strides = [1, 1]} : vector<8x160xf32> to vector<8x32xf32>
      %82 = vector.broadcast %80 : vector<8x1xf32> to vector<8x32xf32>
      %83 = arith.mulf %82, %81 : vector<8x32xf32>
      %84 = arith.addf %79, %83 : vector<8x32xf32>
      %cst_25 = arith.constant dense<0.000000e+00> : vector<8xf32>
      %85 = vector.multi_reduction <add>, %84, %cst_25 [1] : vector<8x32xf32> to vector<8xf32>
      %86 = vector.shape_cast %85 : vector<8xf32> to vector<8x1xf32>
      %cst_26 = arith.constant 3.200000e+01 : f32
      %87 = vector.broadcast %cst_26 : f32 to vector<8x1xf32>
      %88 = arith.divf %86, %87 : vector<8x1xf32>
      %89 = vector.broadcast %88 : vector<8x1xf32> to vector<8x32xf32>
      %90 = arith.subf %84, %89 : vector<8x32xf32>
      %91 = arith.mulf %90, %90 : vector<8x32xf32>
      %cst_27 = arith.constant dense<0.000000e+00> : vector<8xf32>
      %92 = vector.multi_reduction <add>, %91, %cst_27 [1] : vector<8x32xf32> to vector<8xf32>
      %93 = vector.shape_cast %92 : vector<8xf32> to vector<8x1xf32>
      %cst_28 = arith.constant 3.200000e+01 : f32
      %94 = vector.broadcast %cst_28 : f32 to vector<8x1xf32>
      %95 = arith.divf %93, %94 : vector<8x1xf32>
      %cst_29 = arith.constant 9.99999974E-6 : f32
      %96 = vector.broadcast %cst_29 : f32 to vector<8x1xf32>
      %97 = arith.addf %95, %96 : vector<8x1xf32>
      %98 = math.rsqrt %97 : vector<8x1xf32>
      %99 = vector.broadcast %98 : vector<8x1xf32> to vector<8x32xf32>
      %100 = arith.mulf %90, %99 : vector<8x32xf32>
      %c0_30 = arith.constant 0 : index
      %c0_31 = arith.constant 0 : index
      %101 = vector.load %arg7[%c0_30, %c0_31] : memref<1x32xf32, #tpu.memory_space<vmem>>, vector<1x32xf32>
      %102 = vector.broadcast %101 : vector<1x32xf32> to vector<8x32xf32>
      %103 = arith.mulf %100, %102 : vector<8x32xf32>
      %c0_32 = arith.constant 0 : index
      %c0_33 = arith.constant 0 : index
      %104 = vector.load %arg8[%c0_32, %c0_33] : memref<1x32xf32, #tpu.memory_space<vmem>>, vector<1x32xf32>
      %105 = vector.broadcast %104 : vector<1x32xf32> to vector<8x32xf32>
      %106 = arith.addf %103, %105 : vector<8x32xf32>
      %107 = arith.addf %8, %106 : vector<8x32xf32>
      %108 = arith.truncf %107 : vector<8x32xf32> to vector<8x32xbf16>
      %c0_34 = arith.constant 0 : index
      %c0_35 = arith.constant 0 : index
      %109 = vector.load %arg11[%c0_34, %c0_35] : memref<8x32xbf16, #tpu.memory_space<vmem>>, vector<8x32xbf16>
      tpu.vector_store %arg11[%c0_34, %c0_35], %108 {strides = array<i32>} : memref<8x32xbf16, #tpu.memory_space<vmem>>, vector<8x32xbf16>,
    } else {
    }
    %c0 = arith.constant 0 : index
    %c0_1 = arith.constant 0 : index
    %3 = vector.load %arg11[%c0, %c0_1] : memref<8x32xbf16, #tpu.memory_space<vmem>>, vector<8x32xbf16>
    %c0_2 = arith.constant 0 : index
    %c0_3 = arith.constant 0 : index
    %4 = vector.load %arg9[%c0_2, %c0_3] : memref<32x512xbf16, #tpu.memory_space<vmem>>, vector<32x512xbf16>
    %cst = arith.constant dense<0.000000e+00> : vector<8x512xf32>
    %5 = tpu.matmul %3, %4, %cst {dimension_numbers = #tpu.dot_dimension_numbers<[1], [0], [0], [1], [0, 0, 1, 1], [], []>} : vector<8x32xbf16>, vector<32x512xbf16>, vector<8x512xf32> -> vector<8x512xf32>
    %6 = arith.truncf %5 : vector<8x512xf32> to vector<8x512xbf16>
    %c0_4 = arith.constant 0 : index
    %c0_5 = arith.constant 0 : index
    %7 = vector.load %arg10[%c0_4, %c0_5] : memref<8x512xbf16, #tpu.memory_space<vmem>>, vector<8x512xbf16>
    tpu.vector_store %arg10[%c0_4, %c0_5], %6 {strides = array<i32>} : memref<8x512xbf16, #tpu.memory_space<vmem>>, vector<8x512xbf16>,
    return
  }
  func.func @transform_0(%arg0: i32, %arg1: i32) -> (i32, i32) {
    %c0_i32 = arith.constant 0 : i32
    %c0_i32_0 = arith.constant 0 : i32
    return %arg0, %c0_i32 : i32, i32
  }
  func.func @transform_1(%arg0: i32, %arg1: i32) -> (i32, i32) {
    %c0_i32 = arith.constant 0 : i32
    %c0_i32_0 = arith.constant 0 : i32
    return %arg0, %c0_i32 : i32, i32
  }
  func.func @transform_2(%arg0: i32, %arg1: i32) -> (i32, i32) {
    %c0_i32 = arith.constant 0 : i32
    %c0_i32_0 = arith.constant 0 : i32
    %c0_i32_1 = arith.constant 0 : i32
    return %c0_i32, %c0_i32_0 : i32, i32
  }
  func.func @transform_3(%arg0: i32, %arg1: i32) -> (i32, i32) {
    %c0_i32 = arith.constant 0 : i32
    %c0_i32_0 = arith.constant 0 : i32
    %c0_i32_1 = arith.constant 0 : i32
    return %c0_i32, %c0_i32_0 : i32, i32
  }
  func.func @transform_4(%arg0: i32, %arg1: i32) -> (i32, i32) {
    %c0_i32 = arith.constant 0 : i32
    %c0_i32_0 = arith.constant 0 : i32
    %c0_i32_1 = arith.constant 0 : i32
    return %c0_i32, %c0_i32_0 : i32, i32
  }
  func.func @transform_5(%arg0: i32, %arg1: i32) -> (i32, i32) {
    %c0_i32 = arith.constant 0 : i32
    %c0_i32_0 = arith.constant 0 : i32
    %c0_i32_1 = arith.constant 0 : i32
    return %c0_i32, %c0_i32_0 : i32, i32
  }
  func.func @transform_6(%arg0: i32, %arg1: i32) -> (i32, i32) {
    %c0_i32 = arith.constant 0 : i32
    %c0_i32_0 = arith.constant 0 : i32
    %c0_i32_1 = arith.constant 0 : i32
    return %c0_i32, %c0_i32_0 : i32, i32
  }
  func.func @transform_7(%arg0: i32, %arg1: i32) -> (i32, i32) {
    %c0_i32 = arith.constant 0 : i32
    %c0_i32_0 = arith.constant 0 : i32
    return %c0_i32, %arg1 : i32, i32
  }
  func.func @transform_8(%arg0: i32, %arg1: i32) -> (i32, i32) {
    %c0_i32 = arith.constant 0 : i32
    return %arg0, %arg1 : i32, i32
  }
}

</mosaic_0001>

<bundles_post_ra>
// kernel: tpu_custom_call.1
= control target key start
LH: loop header
LB: loop body
LE: loop exit
PB: predicated region body
PF: predicated region fallthrough
CT: control target
= control target key end

     0   :  { %s1564_s0 = inlined_call_operand.hbm [shape: f32[16,32], index: 0, kind: input, shape index: {}]   ;;  %s1565_s1 = inlined_call_operand.vmem [shape: s32[16,1], index: 1, kind: input, shape index: {}]   ;;  %s1566_s2 = inlined_call_operand.vmem [shape: bf16[32,160], index: 2, kind: input, shape index: {}]   ;;  %s1567_s3 = inlined_call_operand.hbm [shape: f32[8,32], index: 3, kind: input, shape index: {}]   ;;  %s1568_s4 = inlined_call_operand.vmem [shape: bf16[32,8], index: 4, kind: input, shape index: {}]   ;;  %s1569_s5 = inlined_call_operand.vmem [shape: f32[1,32], index: 5, kind: input, shape index: {}]   ;;  %s1570_s6 = inlined_call_operand.vmem [shape: f32[1,32], index: 6, kind: input, shape index: {}]   ;;  %s1571_s7 = inlined_call_operand.hbm [shape: bf16[32,512], index: 7, kind: input, shape index: {}]   ;;  %s1572_s8 = inlined_call_operand.hbm [shape: bf16[16,512], index: 8, kind: output, shape index: {}]  }
   0x1   :  { %1574 = sst [smem:[#allocation14_spill]] %s1567_s3 }
   0x2   :  { %1575 = sst [smem:[#allocation15_spill]] %s1571_s7 }
   0x3   :  { %13 = vsyncpa [#allocation4], 0 }
   0x4   :  { %15 = vsyncpa [#allocation4 + $0x1], 0 }
   0x5   :  { %16 = vsyncpa [#allocation7], 0 }
   0x6   :  { %17 = vsyncpa [#allocation5], 0 }
   0x7   :  { %19 = vsyncpa [#allocation5 + $0x1], 0  ;;  %s1353_s27 = smov 0   ;;  %s1355_s28 = smov 0  }
   0x8   :  { %s1357_s29 = smov 0   ;;  %s1359_s30 = smov 0  }
   0x9   :  { %s1361_s9 = smov 0   ;;  %s1363_s10 = smov 0  }
   0xa LB: > { %s897_s11 = sadd.s32 4294967295, %s1290_s10   ;;  %s898_s12 = sadd.s32 4294967294, %s1290_s10   ;;  %s1290_s10 = sphi %s1363_s10, %s25_s10   ;;  %s1286_s9 = sphi %s1361_s9, %s1589_s9   ;;  %s1282_s30 = sphi %s1359_s30, %s1588_s30   ;;  %s1278_s29 = sphi %s1357_s29, %s1587_s29   ;;  %s1274_s28 = sphi %s1355_s28, %s1586_s28   ;;  %s1270_s27 = sphi %s1353_s27, %s1585_s27  }
   0xb   : > { %p57_p0 = scmp.ne.s32.totalorder %s1274_s28, %s1270_s27  ;;  %p1389_p1 = scmp.eq.s32.totalorder %s897_s11, 0 }
   0xc   : > { %p246_p2 = scmp.eq.s32.totalorder %s898_s12, 1  ;;  %p899_p4 = scmp.ge.s32.totalorder %s1290_s10, 1 }
   0xd   : > { %p1395_p3 = por %p1389_p1, %p57_p0  ;;  %p253_p6 = scmp.lt.s32.totalorder %s1290_s10, 3 }
   0xe   : > { %p1400_p5 = por %p246_p2, %p57_p0  ;;  %s1580_s3 = sld [smem:[#allocation14_spill]] }
   0xf   : > { %p1408_p7 = pnand %p899_p4, %p253_p6  ;;  %p902_p8 = scmp.ge.s32.totalorder %s1290_s10, 2 }
  0x10   : > { %s1578_s15 = scalar_select %p1400_p5, 1, 0 }
  0x11   : > { %p1009_p9 = pneg %p1408_p7  ;;  %s1292_s20 = smov [#allocation6]  }
  0x12   : > { %1579 = sst [smem:[#allocation13_spill]] %s1578_s15  ;;  %s270_s21 = sshll.u32 %s1292_s20, 4  ;;  %s271_s21 = int_to_ptr.vmem [resolvable:$true] %s270_s21 }
  0x13   : > { %s1582_s7 = sld [smem:[#allocation15_spill]]  ;;  %p1010_p10 = pnand %p1009_p9, %p1389_p1 }
  0x14   : > { %s268_s18 = sshll.u32 %s1580_s3, 4  ;;  %s1293_s25 = smov [#allocation8]   ;;  %s269_s18 = int_to_ptr.hbm [resolvable:$true] %s268_s18 }
  0x15   : > { %s293_s26 = sshll.u32 %s1293_s25, 4  ;;  %s1294_s12 = smov 256   ;;  %s294_s26 = int_to_ptr.vmem [resolvable:$true] %s293_s26 }
  0x16   : > { %1012 = dma.hbm_to_vmem [thread:$0]  (!%p1010_p10), %s269_s18, 128, %s271_s21, [#allocation7]  }
  0x17   : > { %s1295_s16 = smov 16   ;;  %p240_p11 = scmp.eq.s32.totalorder %s897_s11, 1 }
  0x18   : > { %s37_s17 = sadd.s32 1, %s1286_s9  ;;  %s44_s20 = sadd.s32 1, %s1278_s29 }
  0x19   : > { %s291_s24 = sshll.u32 %s1582_s7, 4  ;;  %p39_p12 = scmp.ge.s32.totalorder %s37_s17, 2  ;;  %s292_s24 = int_to_ptr.hbm [resolvable:$true] %s291_s24 }
  0x1a   : > { %1015 = dma.hbm_to_vmem [thread:$0]  (!%p1010_p10), %s292_s24, 1024, %s294_s26, [#allocation7], %s1294_s12, %s1294_s12, %s1295_s16  }
  0x1b   : > { %p51_p13 = scmp.ne.s32.totalorder %s1278_s29, %s1274_s28  ;;  %p52_p0 = scmp.eq.s32.totalorder %s1290_s10, 0 }
  0x1c   : > { %s1591_s17 = smov (%p39_p12, %s37_s17), 0  ;;  %p1026_p4 = scmp.lt.s32.totalorder %s1290_s10, 2 }
  0x1d   : > { %p1429_p2 = por %p240_p11, %p51_p13  ;;  %s41_s18 = ssub.s32 %s1286_s9, %s1591_s17 }
  0x1e   : > { %s307_s21 = sand.u32 1, %s1278_s29   ;;  %p42_p6 = scmp.eq.s32.totalorder %s41_s18, 0 }
  0x1f   : > { %p53_p9 = por %p52_p0, %p51_p13  ;;  %s903_s23 = sshll.u32 %s307_s21, 3 }
  0x20   : > { %s904_s11 = sshll.u32 %s1286_s9, 3  ;;  %s311_s3 = scalar_lea.vmem [#allocation3], %s903_s23 }
  0x21   : > { %s1439_s24 = scalar_select %p42_p6, %s1278_s29, %s44_s20  }
  0x22   : > { %s315_s12 = scalar_lea.hbm %s1564_s0, %s904_s11  ;;  %s319_s7 = sshll.u32 %s311_s3, 4  ;;  %s320_s7 = int_to_ptr.vmem [resolvable:$true] %s319_s7 }
  0x23   : > { %s317_s16 = sshll.u32 %s315_s12, 4  ;;  %p1017_p10 = pnand %p1026_p4, %p53_p9  ;;  %s318_s16 = int_to_ptr.hbm [resolvable:$true] %s317_s16 }
  0x24   : > { %s308_s15 = scalar_lea.sflag [#allocation4], %s307_s21  ;;  %335 = sbr.rel (%p1408_p7) target bundleno = 1341 (0x53d), region = 52 }
  0x25   : > { %1019 = dma.hbm_to_vmem [thread:$0]  (!%p1017_p10), %s318_s16, 128, %s320_s7, %s308_s15  }
  0x26   : > { %s1449_s20 = sand.u32 (!%p1408_p7), 1, %s1274_s28  }
  0x27   : > { %s906_s18 = sshll.u32 (!%p1408_p7), %s1449_s20, 3  ;;  %s338_s11 = scalar_lea.sflag (!%p1408_p7), [#allocation4], %s1449_s20 }
  0x28   : > { %s341_s25 = scalar_lea.vmem (!%p1408_p7), [#allocation3], %s906_s18 }
  0x29   : > { %1257 = dma.done.wait (%p1395_p3), %s338_s11, 128  }
  0x2a   : > { %1259 = vsyncadd (%p1395_p3), %s338_s11, 4294967168 }
  0x2b   : > { %1261 = dma.done.wait (%p1389_p1), [#allocation7], 1152  }
  0x2c   : > { %1263 = vsyncadd (%p1389_p1), [#allocation7], 4294966144  ;;  %v983_v0 = vld [vmem:[%s1568_s4 + $0x8] sm:$0xff]  ;;  %v982_v1 = vld [vmem:[%s1568_s4] sm:$0xff]  ;;  %vm419_vm0 = vcmask 261120   ;;  %p389_p1 = scmp.lt.s32.totalorder %s1282_s30, 1 }
  0x2d   : > { %429 = vmatpush.bf16.msra.mxu0 %v983_v0  ;;  %v1467_v2 = vld [vmem:[%s341_s25] sm:$0xff]  ;;  %v1296_v5 = vmov 0   ;;  %v1297_v6 = vmov 0.0   ;;  %vm461_vm2 = vcmask 64544   ;;  %vm439_vm3 = vcmask 31744   ;;  %s1298_s12 = smov 124  }
  0x2e   : > { %v1471_v3 = vpack.c.bf16 %v1467_v2, %v1467_v2  ;;  %s390_s13 = scalar_select %p389_p1, %s1282_s30, 1  ;;  %1094 = vset.pattern.permute.xlu2 %v1296_v5  ;;  %1095 = vset.pattern.permute.xlu1 %v1296_v5  ;;  %v932_v24 = vld [vmem:[%s1566_s2 + $0x10] sm:$0xf]  ;;  %v987_v25 = vld [vmem:[%s1566_s2 + $0x14] sm:$0xf0]  ;;  %v1300_v36 = vmov 2  }
  0x2f   : > { %v924_v26 = vld [vmem:[%s1566_s2] sm:$0xf]  ;;  %v933_v27 = vor.u32 %v987_v25, %v932_v24  ;;  %v985_v28 = vld [vmem:[%s1566_s2 + $0x4] sm:$0xf0]  ;;  %v496_v35 = vld [vmem:[#allocation6] sm:$0xff]  ;;  %1097 = vset.pattern.permute.xlu0 %v1300_v36  ;;  %v1301_v37 = vmov 1  }
  0x30   : > { %s910_s14 = sshll.u32 %s390_s13, 3  ;;  %v925_v29 = vor.u32 %v985_v28, %v924_v26  ;;  %s1299_s13 = smov 125   ;;  %571 = vmatpush.msra.mxu3 %v496_v35  ;;  %vm491_vm5 = vcmask 23552   ;;  %vm494_vm6 = vcmask 39936   ;;  %vm553_vm7 = vcmask 64512  }
  0x31   : > { %430 = vmatpush.bf16.msra.mxu0 %v982_v1  ;;  %s392_s26 = scalar_lea.vmem %s1565_s1, %s910_s14  ;;  %527 = vmatpush.bf16.msra.mxu1 %v933_v27  ;;  %v1302_v51 = vmov 3   ;;  %v986_v52 = vld [vmem:[%s1566_s2 + $0x14] sm:$0xf]  ;;  %v934_v53 = vld [vmem:[%s1566_s2 + $0x18] sm:$0xf0]  ;;  %v1303_v58 = vmov 4  }
  0x32   : > { %v402_v4 = vld [vmem:[%s392_s26] sm:$0xff]  ;;  %v937_v55 = vor.u32 %v986_v52, %v934_v53  ;;  %v926_v56 = vld [vmem:[%s1566_s2 + $0x8] sm:$0xf0]  ;;  %s1304_s25 = smov 64   ;;  %s1305_s3 = smov 96   ;;  %vm653_vm12 = vcmask 257024  }
  0x33   : > { %vm458_vm1 = vcmp.eq.s32.totalorder %v402_v4, 2  ;;  %vm436_vm4 = vcmp.eq.s32.totalorder %v402_v4, 1  ;;  %v984_v54 = vld [vmem:[%s1566_s2 + $0x4] sm:$0xf]  ;;  %s1306_s7 = smov 32   ;;  %s996_s21 = sshll.u32 %s1282_s30, 4 }
  0x34   : > { %919 = vmatmul.msk.bf16.vlgmr.msra.gmra.mxu0 %vm419_vm0, %v1471_v3  ;;  %v921_v7 = vsel %vm458_vm1, 1.0, %v1297_v6  ;;  %v920_v23 = vsel %vm436_vm4, 1.0, %v1297_v6  ;;  %540 = vmatpush.bf16.msra.mxu2 %v937_v55  ;;  %v929_v57 = vor.u32 %v984_v54, %v926_v56  ;;  %v961_v35 = vld [vmem:[#allocation8 + $0x30] sm:$0xf0]  ;;  %v967_v36 = vld [vmem:[#allocation8 + $0x28] sm:$0xf]  ;;  %s778_s16 = scalar_lea.hbm %s1572_s8, %s996_s21 }
  0x35   : > { %479 = vperm.xlu2 %1094, %v921_v7   ;;  %528 = vmatpush.bf16.msra.mxu1 %v925_v29  ;;  %v951_v54 = vld [vmem:[#allocation8 + $0x8] sm:$0xf]  ;;  %v991_v55 = vld [vmem:[#allocation8 + $0x14] sm:$0xf0]  ;;  %s909_s23 = sshll.u32 %s1449_s20, 4  ;;  %s765_s30 = scalar_lea.sflag [#allocation5], %s1449_s20 }
  0x36   : > { %v952_v56 = vor.u32 %v991_v55, %v951_v54  ;;  %s388_s18 = scalar_lea.vmem [#allocation9], %s909_s23 }
  0x37   : > { %s780_s11 = sshll.u32 %s388_s18, 4  ;;  %s781_s11 = int_to_ptr.vmem [resolvable:$true] %s780_s11 }
  0x38   : > { %938 = vmatmul.msk.bf16.vlgmr.msra.gmra.mxu1 %vm419_vm0, %v1471_v3  ;;  %541 = vmatpush.bf16.msra.mxu2 %v929_v57 }
  0x3b   : > { %939 = vmatmul.msk.bf16.vlgmr.msra.gmra.mxu2 %vm419_vm0, %v1471_v3 }
  0x8f   : > { %v480_v33 = vpop.permute.xlu2 %479 }
  0xb1   : > { %v432_v8 = vpop.f32.mrf.mxu0 }
  0xb2   : > { %v462_v9 = vsel %vm461_vm2, %v432_v8, -inf  ;;  %v440_v10 = vsel %vm439_vm3, %v432_v8, -inf }
  0xb3   : > { %463 = vmax.xlane.f32.xlu0 %v462_v9  ;;  %441 = vmax.xlane.f32.xlu1 %v440_v10 }
  0xb5   : > { %v530_v44 = vpop.f32.mrf.mxu1 }
  0xb9   : > { %v434_v11 = vpop.f32.mrf.mxu0 }
  0xbd   : > { %v532_v50 = vpop.f32.mrf.mxu1 }
  0xbe   : > { %v543_v1 = vpop.f32.mrf.mxu2  ;;  %v988_v50 = vld [vmem:[#allocation8 + $0x4] sm:$0xf] }
  0xc6   : > { %v545_v4 = vpop.f32.mrf.mxu2 }
 0x126   : > { %v464_v12 = vpop.xlane.xlu0 %463  ;;  %v442_v13 = vpop.xlane.xlu1 %441 }
 0x127   : > { %v465_v14 = vsub.f32 %v432_v8, %v464_v12  ;;  %v443_v15 = vsub.f32 %v432_v8, %v442_v13 }
 0x129   : > { %v466_v16 = vmul.f32 1.442695, %v465_v14  ;;  %v444_v17 = vmul.f32 1.442695, %v443_v15 }
 0x12b   : > { %1102 = vpow2.f32 %v466_v16 }
 0x12c   : > { %1104 = vpow2.f32 %v444_v17 }
 0x131   : > { %v1103_v18 = vpop.eup %1102 }
 0x132   : > { %v1105_v19 = vpop.eup %1104  ;;  %469 = vrot.lane.b32.xlu0 %v1103_v18, %s1298_s12 }
 0x133   : > { %v446_v20 = vsel %vm439_vm3, %v1105_v19, 0.0 }
 0x134   : > { %447 = vadd.xlane.f32.xlu2 %v446_v20 }
 0x1a4   : > { %v470_v21 = vpop.permute.xlu0 %469 }
 0x1a5   : > { %v472_v22 = vsel %vm439_vm3, %v470_v21, 0.0 }
 0x1a6   : > { %473 = vadd.xlane.f32.xlu1 %v472_v22 }
 0x1a7   : > { %v448_v38 = vpop.xlane.xlu2 %447 }
 0x1bf   : > { %453 = vperm.xlu1 %1095, %v920_v23  }
 0x1c7   : > { %1096 = vset.pattern.permute.xlu1 %v1301_v37  ;;  %v995_v37 = vld [vmem:[#allocation8 + $0x34] sm:$0xf0] }
 0x219   : > { %v474_v30 = vpop.xlane.xlu1 %473 }
 0x21a   : > { %1106 = vrcp.f32 %v474_v30  ;;  %v993_v30 = vld [vmem:[#allocation8 + $0x2c] sm:$0xf] }
 0x21b   : > { %1108 = vrcp.f32 %v448_v38 }
 0x220   : > { %v1107_v31 = vpop.eup %1106 }
 0x221   : > { %v476_v32 = vmul.f32 %v1107_v31, %v1103_v18  ;;  %v1109_v39 = vpop.eup %1108  ;;  %v1307_v18 = vmov 32.0   ;;  %v969_v31 = vld [vmem:[#allocation8 + $0x38] sm:$0xf0] }
 0x222   : > { %v450_v41 = vmul.f32 %v1109_v39, %v1105_v19  ;;  %1110 = vrcp.f32 %v1307_v18 }
 0x223   : > { %v482_v34 = vmul.f32 %v480_v33, %v476_v32  ;;  %v992_v32 = vld [vmem:[#allocation8 + $0x24] sm:$0xf] }
 0x224   : > { %v964_v39 = vor.u32 %v992_v32, %v961_v35 }
 0x225   : > { %484 = vrot.lane.b32.xlu0 %v482_v34, %s1298_s12 }
 0x226   : > { %727 = vmatpush.bf16.msrb.mxu0 %v964_v39 }
 0x228   : > { %v1111_v19 = vpop.eup %1110 }
 0x229   : > { %v616_v20 = vmul.f32 32.0, %v1111_v19  ;;  %vm620_vm8 = vweird.f32 %v1111_v19 }
 0x22b   : > { %v617_v21 = vsub.f32 1.0, %v616_v20 }
 0x22d   : > { %488 = vrot.lane.b32.xlu0 %v482_v34, %s1299_s13  ;;  %v618_v22 = vmul.f32 %v1111_v19, %v617_v21  ;;  %v972_v34 = vor.u32 %v993_v30, %v969_v31  ;;  %s1224_s13 = scalar_lea.hbm %s1572_s8, 32 }
 0x22f   : > { %v619_v23 = vadd.f32 %v1111_v19, %v618_v22  ;;  %753 = vmatpush.bf16.msrb.mxu2 %v972_v34 }
 0x231   : > { %v454_v40 = vpop.permute.xlu1 %453  ;;  %v621_v24 = vsel %vm620_vm8, %v1111_v19, %v619_v23 }
 0x232   : > { %v456_v43 = vmul.f32 %v454_v40, %v450_v41  ;;  %v968_v40 = vor.u32 %v995_v37, %v967_v36  ;;  %v959_v41 = vld [vmem:[#allocation8 + $0x20] sm:$0xf] }
 0x234   : > { %740 = vmatpush.bf16.msrb.mxu1 %v968_v40 }
 0x238   : > { %741 = vmatpush.bf16.msrb.mxu1 %v952_v56 }
 0x297   : > { %v485_v42 = vpop.permute.xlu0 %484 }
 0x298   : > { %v487_v45 = vadd.f32 %v485_v42, %v456_v43  ;;  %v994_v42 = vld [vmem:[#allocation8 + $0x2c] sm:$0xf0] }
 0x29a   : > { %v492_v47 = vsel %vm491_vm5, %v487_v45, %v456_v43  ;;  %v989_v43 = vld [vmem:[#allocation8 + $0xc] sm:$0xf]  ;;  %v953_v45 = vld [vmem:[#allocation8 + $0x18] sm:$0xf0] }
 0x29f   : > { %v489_v46 = vpop.permute.xlu0 %488 }
 0x2a0   : > { %v493_v48 = vsel %vm439_vm3, %v492_v47, %v489_v46  ;;  %v943_v46 = vld [vmem:[#allocation8] sm:$0xf]  ;;  %v990_v47 = vld [vmem:[#allocation8 + $0xc] sm:$0xf0] }
 0x2a1   : > { %v495_v49 = vsel %vm494_vm6, %v493_v48, 0.0  ;;  %v944_v52 = vor.u32 %v990_v47, %v943_v46 }
 0x2a2   : > { %549 = vperm.xlu2 %1094, %v495_v49   ;;  %587 = vperm.xlu0 %1097, %v495_v49  }
 0x2a3   : > { %577 = vperm.xlu1 %1096, %v495_v49   ;;  %940 = vmatmul.msk.f32.vlgmr.msra.gmra.mxu3 %vm553_vm7, %v495_v49 }
 0x2aa   : > { %1099 = vset.pattern.permute.xlu0 %v1303_v58 }
 0x2ab   : > { %1098 = vset.pattern.permute.xlu1 %v1302_v51  ;;  %v945_v51 = vld [vmem:[#allocation8 + $0x10] sm:$0xf0] }
 0x2ac   : > { %597 = vperm.xlu1 %1098, %v495_v49   ;;  %v948_v53 = vor.u32 %v988_v50, %v945_v51 }
 0x2ae   : > { %728 = vmatpush.bf16.msrb.mxu0 %v948_v53 }
 0x2fc   : > { %v550_v5 = vpop.permute.xlu2 %549 }
 0x2fd   : > { %v552_v7 = vmul.f32 %v550_v5, %v530_v44 }
 0x314   : > { %v588_v59 = vpop.permute.xlu0 %587 }
 0x315   : > { %v590_v60 = vmul.f32 %v588_v59, %v530_v44  ;;  %v578_v61 = vpop.permute.xlu1 %577 }
 0x316   : > { %v580_v62 = vmul.f32 %v578_v61, %v530_v44 }
 0x317   : > { %592 = vrot.lane.b32.xlu0 %v590_v60, %s1304_s25  ;;  %s782_s25 = sshll.u32 %s778_s16, 4  ;;  %s783_s25 = int_to_ptr.hbm [resolvable:$true] %s782_s25 }
 0x318   : > { %582 = vrot.lane.b32.xlu1 %v580_v62, %s1305_s3  ;;  %s1218_s3 = sshra.s32 %s783_s25, 4  ;;  %s1219_s3 = int_to_ptr.hbm [resolvable:$true] %s1218_s3 }
 0x319   : > { %p1225_p12 = scmp.lt.s32.totalorder %s1219_s3, %s1572_s8 }
 0x31e   : > { %v598_v63 = vpop.permute.xlu1 %597 }
 0x31f   : > { %v600_v0 = vmul.f32 %v598_v63, %v530_v44  ;;  %607 = vperm.xlu0 %1099, %v495_v49   ;;  %v960_v44 = vor.u32 %v994_v42, %v959_v41  ;;  %v956_v49 = vor.u32 %v989_v43, %v953_v45  ;;  %v1100_v63 = vld [vmem:[%s1569_s5] ss:$0 sm:$0xff] }
 0x321   : > { %602 = vrot.lane.b32.xlu1 %v600_v0, %s1306_s7  ;;  %714 = vmatpush.bf16.msrb.mxu3 %v960_v44  ;;  %s1220_s7 = scalar_lea.hbm %s1219_s3, 16 }
 0x322   : > { %754 = vmatpush.bf16.msrb.mxu2 %v956_v49  ;;  %p1221_p3 = scmp.ne.s32.totalorder %s1219_s3, %s1220_s7  ;;  %p1226_p13 = scmp.lt.s32.totalorder %s1224_s13, %s1220_s7 }
 0x324   : > { %p1222_p7 = pnand %p1221_p3, %p1429_p2  ;;  %p1227_p0 = por %p1226_p13, %p1225_p12 }
 0x325   : > { %715 = vmatpush.bf16.msrb.mxu3 %v944_v52 }
 0x326   : > { %v573_v6 = vpop.f32.mrf.mxu3  ;;  %p1223_p11 = pneg %p1222_p7 }
 0x327   : > { %v574_v9 = vadd.f32 %v573_v6, %v552_v7 }
 0x328   : > { %p1228_p4 = pnand %p1227_p0, %p1223_p11 }
 0x389   : > { %v593_v3 = vpop.permute.xlu0 %592 }
 0x38a   : > { %v583_v8 = vpop.permute.xlu1 %582 }
 0x38b   : > { %v585_v10 = vadd.f32 %v583_v8, %v574_v9 }
 0x38d   : > { %v595_v13 = vadd.f32 %v593_v3, %v585_v10 }
 0x391   : > { %v608_v11 = vpop.permute.xlu0 %607 }
 0x392   : > { %v610_v12 = vmul.f32 %v608_v11, %v543_v1  ;;  %v1101_v1 = vld [vmem:[%s1570_s6] ss:$0 sm:$0xff] }
 0x393   : > { %v603_v14 = vpop.permute.xlu1 %602 }
 0x394   : > { %v605_v15 = vadd.f32 %v603_v14, %v595_v13 }
 0x396   : > { %v611_v16 = vadd.f32 %v610_v12, %v605_v15 }
 0x398   : > { %v612_v17 = vsel %vm419_vm0, %v611_v16, 0.0 }
 0x399   : > { %613 = vadd.xlane.f32.xlu1 %v612_v17 }
 0x40c   : > { %v614_v25 = vpop.xlane.xlu1 %613 }
 0x40d   : > { %v622_v26 = vmul.f32 %v621_v24, %v614_v25 }
 0x40f   : > { %v623_v27 = vsub.f32 %v611_v16, %v622_v26 }
 0x411   : > { %v624_v28 = vmul.f32 %v623_v27, %v623_v27 }
 0x413   : > { %v625_v29 = vsel %vm419_vm0, %v624_v28, 0.0 }
 0x414   : > { %626 = vadd.xlane.f32.xlu2 %v625_v29 }
 0x487   : > { %v627_v33 = vpop.xlane.xlu2 %626 }
 0x488   : > { %v628_v38 = vmul.f32 %v627_v33, %v621_v24 }
 0x48a   : > { %v629_v48 = vadd.f32 1e-05, %v628_v38 }
 0x48c   : > { %1112 = vrsqrt.f32 %v629_v48  ;;  %vm636_vm10 = vweird.f32 %v629_v48 }
 0x492   : > { %v1113_v57 = vpop.eup %1112 }
 0x493   : > { %v631_v58 = vmul.f32 %v1113_v57, %v629_v48  ;;  %vm637_vm9 = vweird.f32 %v1113_v57 }
 0x494   : > { %vm638_vm11 = vmor %vm636_vm10, %vm637_vm9 }
 0x495   : > { %v632_v59 = vmul.f32 %v1113_v57, %v631_v58 }
 0x497   : > { %v633_v60 = vmul.f32 0.5, %v632_v59 }
 0x499   : > { %v634_v61 = vsub.f32 1.5, %v633_v60 }
 0x49b   : > { %v635_v62 = vmul.f32 %v1113_v57, %v634_v61 }
 0x49d   : > { %v639_v0 = vsel %vm638_vm11, %v1113_v57, %v635_v62 }
 0x49e   : > { %v640_v4 = vmul.f32 %v639_v0, %v623_v27 }
 0x4a0   : > { %v645_v5 = vmul.f32 %v1100_v63, %v640_v4 }
 0x4a2   : > { %v650_v6 = vadd.f32 %v1101_v1, %v645_v5 }
 0x4a4   : > { %v651_v3 = vadd.f32 %v650_v6, %v1467_v2 }
 0x4a6   : > { %v652_v7 = vpack.c.bf16 %v651_v3, %v651_v3 }
 0x4a8   : > { %654 = vst.msk [vmem:[#allocation2] sm:$0xf] %vm653_vm12, %v652_v7 }
 0x4af   : > { %v655_v8 = vld [vmem:[#allocation2] sm:$0xf] }
 0x4b0   : > { %973 = vmatmul.msk.bf16.vlgmr.msrb.gmra.mxu3 %vm419_vm0, %v655_v8  ;;  %974 = vmatmul.msk.bf16.vlgmr.msrb.gmra.mxu0 %vm419_vm0, %v655_v8 }
 0x4b1   : > { %975 = vmatmul.msk.bf16.vlgmr.msrb.gmra.mxu1 %vm419_vm0, %v655_v8  ;;  %976 = vmatmul.msk.bf16.vlgmr.msrb.gmra.mxu2 %vm419_vm0, %v655_v8 }
 0x52d   : > { %v730_v9 = vpop.f32.mrf.mxu0 }
 0x52e   : > { %v743_v10 = vpop.f32.mrf.mxu1 }
 0x533   : > { %v717_v2 = vpop.f32.mrf.mxu3 }
 0x534   : > { %v760_v11 = vpack.c.bf16 %v730_v9, %v717_v2  ;;  %v756_v12 = vpop.f32.mrf.mxu2 }
 0x535   : > { %v761_v13 = vpack.c.bf16 %v756_v12, %v743_v10  ;;  %v732_v14 = vpop.f32.mrf.mxu0 }
 0x536   : > { %762 = vst [vmem:[%s388_s18] sm:$0xff] %v760_v11  ;;  %v745_v15 = vpop.f32.mrf.mxu1 }
 0x537   : > { %763 = vst [vmem:[%s388_s18 + $0x8] sm:$0xff] %v761_v13 }
 0x538   : > { %1231 = shalt.err (!%p1228_p4)
}
 0x539   : > { %1007 = dma.vmem_to_hbm [thread:$0]  (%p1429_p2), %s781_s11, 256, %s783_s25, %s765_s30  }
 0x53b   : > { %v719_v16 = vpop.f32.mrf.mxu3 }
 0x53c   : > { %v758_v17 = vpop.f32.mrf.mxu2 }
 0x53d PF: > { %s794_s23 = sand.u32 1, %s1270_s27   ;;  %p1021_p6 = pnand %p902_p8, %p1400_p5 }
 0x53e   : > { %s795_s26 = scalar_lea.sflag [#allocation5], %s794_s23 }
 0x53f   : > { %p1022_p9 = pneg %p1021_p6 }
 0x541   : > { %1265 = dma.done.wait (%p1022_p9), %s795_s26, 256  }
 0x542   : > { %1267 = vsyncadd (%p1022_p9), %s795_s26, 4294967040  ;;  %s25_s10 = sadd.s32 1, %s1290_s10   ;;  %s1585_s27 = smov %s1274_s28 }
 0x543   : > { %p22_p10 = scmp.ge.s32.totalorder %s25_s10, 4   ;;  %s1586_s28 = smov %s1278_s29 }
 0x544   : > { %s1587_s29 = smov %s1439_s24  ;;  %s1588_s30 = smov %s1286_s9 }
 0x545   : > { %s1589_s9 = smov %s1591_s17  ;;  %24 = sbr.rel (!%p22_p10) target bundleno = 10 (0xa), region = 113 }
 0x54a   :  { %801 = vsyncpa [#allocation4], 1 }
 0x54b   :  { %803 = vsyncpa [#allocation4 + $0x1], 1 }
 0x54c   :  { %804 = vsyncpa [#allocation7], 1 }
 0x54d   :  { %805 = vsyncpa [#allocation5], 1 }
 0x54e   :  { %807 = vsyncpa [#allocation5 + $0x1], 1 }

// kernel: tpu_custom_call.1
= control target key start
LH: loop header
LB: loop body
LE: loop exit
PB: predicated region body
PF: predicated region fallthrough
CT: control target
= control target key end

     0   :  { %s1564_s0 = inlined_call_operand.hbm [shape: f32[16,32], index: 0, kind: input, shape index: {}]   ;;  %s1565_s1 = inlined_call_operand.vmem [shape: s32[16,1], index: 1, kind: input, shape index: {}]   ;;  %s1566_s2 = inlined_call_operand.vmem [shape: bf16[32,160], index: 2, kind: input, shape index: {}]   ;;  %s1567_s3 = inlined_call_operand.hbm [shape: f32[8,32], index: 3, kind: input, shape index: {}]   ;;  %s1568_s4 = inlined_call_operand.vmem [shape: bf16[32,8], index: 4, kind: input, shape index: {}]   ;;  %s1569_s5 = inlined_call_operand.vmem [shape: f32[1,32], index: 5, kind: input, shape index: {}]   ;;  %s1570_s6 = inlined_call_operand.vmem [shape: f32[1,32], index: 6, kind: input, shape index: {}]   ;;  %s1571_s7 = inlined_call_operand.hbm [shape: bf16[32,512], index: 7, kind: input, shape index: {}]   ;;  %s1572_s8 = inlined_call_operand.hbm [shape: bf16[16,512], index: 8, kind: output, shape index: {}]  }
   0x1   :  { %1574 = sst [smem:[#allocation14_spill]] %s1567_s3 }
   0x2   :  { %1575 = sst [smem:[#allocation15_spill]] %s1571_s7 }
   0x3   :  { %13 = vsyncpa [#allocation4], 0 }
   0x4   :  { %15 = vsyncpa [#allocation4 + $0x1], 0 }
   0x5   :  { %16 = vsyncpa [#allocation7], 0 }
   0x6   :  { %17 = vsyncpa [#allocation5], 0 }
   0x7   :  { %19 = vsyncpa [#allocation5 + $0x1], 0  ;;  %s1353_s27 = smov 0   ;;  %s1355_s28 = smov 0  }
   0x8   :  { %s1357_s29 = smov 0   ;;  %s1359_s30 = smov 0  }
   0x9   :  { %s1361_s9 = smov 0   ;;  %s1363_s10 = smov 0  }
   0xa LB: > { %s897_s11 = sadd.s32 4294967295, %s1290_s10   ;;  %s898_s12 = sadd.s32 4294967294, %s1290_s10   ;;  %s1290_s10 = sphi %s1363_s10, %s25_s10   ;;  %s1286_s9 = sphi %s1361_s9, %s1589_s9   ;;  %s1282_s30 = sphi %s1359_s30, %s1588_s30   ;;  %s1278_s29 = sphi %s1357_s29, %s1587_s29   ;;  %s1274_s28 = sphi %s1355_s28, %s1586_s28   ;;  %s1270_s27 = sphi %s1353_s27, %s1585_s27  }
   0xb   : > { %p57_p0 = scmp.ne.s32.totalorder %s1274_s28, %s1270_s27  ;;  %p1389_p1 = scmp.eq.s32.totalorder %s897_s11, 0 }
   0xc   : > { %p246_p2 = scmp.eq.s32.totalorder %s898_s12, 1  ;;  %p899_p4 = scmp.ge.s32.totalorder %s1290_s10, 1 }
   0xd   : > { %p1395_p3 = por %p1389_p1, %p57_p0  ;;  %p253_p6 = scmp.lt.s32.totalorder %s1290_s10, 3 }
   0xe   : > { %p1400_p5 = por %p246_p2, %p57_p0  ;;  %s1580_s3 = sld [smem:[#allocation14_spill]] }
   0xf   : > { %p1408_p7 = pnand %p899_p4, %p253_p6  ;;  %p902_p8 = scmp.ge.s32.totalorder %s1290_s10, 2 }
  0x10   : > { %s1578_s15 = scalar_select %p1400_p5, 1, 0 }
  0x11   : > { %p1009_p9 = pneg %p1408_p7  ;;  %s1292_s20 = smov [#allocation6]  }
  0x12   : > { %1579 = sst [smem:[#allocation13_spill]] %s1578_s15  ;;  %s270_s21 = sshll.u32 %s1292_s20, 4  ;;  %s271_s21 = int_to_ptr.vmem [resolvable:$true] %s270_s21 }
  0x13   : > { %s1582_s7 = sld [smem:[#allocation15_spill]]  ;;  %p1010_p10 = pnand %p1009_p9, %p1389_p1 }
  0x14   : > { %s268_s18 = sshll.u32 %s1580_s3, 4  ;;  %s1293_s25 = smov [#allocation8]   ;;  %s269_s18 = int_to_ptr.hbm [resolvable:$true] %s268_s18 }
  0x15   : > { %s293_s26 = sshll.u32 %s1293_s25, 4  ;;  %s1294_s12 = smov 256   ;;  %s294_s26 = int_to_ptr.vmem [resolvable:$true] %s293_s26 }
  0x16   : > { %1012 = dma.hbm_to_vmem [thread:$0]  (!%p1010_p10), %s269_s18, 128, %s271_s21, [#allocation7]  }
  0x17   : > { %s1295_s16 = smov 16   ;;  %p240_p11 = scmp.eq.s32.totalorder %s897_s11, 1 }
  0x18   : > { %s37_s17 = sadd.s32 1, %s1286_s9  ;;  %s44_s20 = sadd.s32 1, %s1278_s29 }
  0x19   : > { %s291_s24 = sshll.u32 %s1582_s7, 4  ;;  %p39_p12 = scmp.ge.s32.totalorder %s37_s17, 2  ;;  %s292_s24 = int_to_ptr.hbm [resolvable:$true] %s291_s24 }
  0x1a   : > { %1015 = dma.hbm_to_vmem [thread:$0]  (!%p1010_p10), %s292_s24, 1024, %s294_s26, [#allocation7], %s1294_s12, %s1294_s12, %s1295_s16  }
  0x1b   : > { %p51_p13 = scmp.ne.s32.totalorder %s1278_s29, %s1274_s28  ;;  %p52_p0 = scmp.eq.s32.totalorder %s1290_s10, 0 }
  0x1c   : > { %s1591_s17 = smov (%p39_p12, %s37_s17), 0  ;;  %p1026_p4 = scmp.lt.s32.totalorder %s1290_s10, 2 }
  0x1d   : > { %p1429_p2 = por %p240_p11, %p51_p13  ;;  %s41_s18 = ssub.s32 %s1286_s9, %s1591_s17 }
  0x1e   : > { %s307_s21 = sand.u32 1, %s1278_s29   ;;  %p42_p6 = scmp.eq.s32.totalorder %s41_s18, 0 }
  0x1f   : > { %p53_p9 = por %p52_p0, %p51_p13  ;;  %s903_s23 = sshll.u32 %s307_s21, 3 }
  0x20   : > { %s904_s11 = sshll.u32 %s1286_s9, 3  ;;  %s311_s3 = scalar_lea.vmem [#allocation3], %s903_s23 }
  0x21   : > { %s1439_s24 = scalar_select %p42_p6, %s1278_s29, %s44_s20  }
  0x22   : > { %s315_s12 = scalar_lea.hbm %s1564_s0, %s904_s11  ;;  %s319_s7 = sshll.u32 %s311_s3, 4  ;;  %s320_s7 = int_to_ptr.vmem [resolvable:$true] %s319_s7 }
  0x23   : > { %s317_s16 = sshll.u32 %s315_s12, 4  ;;  %p1017_p10 = pnand %p1026_p4, %p53_p9  ;;  %s318_s16 = int_to_ptr.hbm [resolvable:$true] %s317_s16 }
  0x24   : > { %s308_s15 = scalar_lea.sflag [#allocation4], %s307_s21  ;;  %335 = sbr.rel (%p1408_p7) target bundleno = 1341 (0x53d), region = 52 }
  0x25   : > { %1019 = dma.hbm_to_vmem [thread:$0]  (!%p1017_p10), %s318_s16, 128, %s320_s7, %s308_s15  }
  0x26   : > { %s1449_s20 = sand.u32 (!%p1408_p7), 1, %s1274_s28  }
  0x27   : > { %s906_s18 = sshll.u32 (!%p1408_p7), %s1449_s20, 3  ;;  %s338_s11 = scalar_lea.sflag (!%p1408_p7), [#allocation4], %s1449_s20 }
  0x28   : > { %s341_s25 = scalar_lea.vmem (!%p1408_p7), [#allocation3], %s906_s18 }
  0x29   : > { %1257 = dma.done.wait (%p1395_p3), %s338_s11, 128  }
  0x2a   : > { %1259 = vsyncadd (%p1395_p3), %s338_s11, 4294967168 }
  0x2b   : > { %1261 = dma.done.wait (%p1389_p1), [#allocation7], 1152  }
  0x2c   : > { %1263 = vsyncadd (%p1389_p1), [#allocation7], 4294966144  ;;  %v983_v0 = vld [vmem:[%s1568_s4 + $0x8] sm:$0xff]  ;;  %v982_v1 = vld [vmem:[%s1568_s4] sm:$0xff]  ;;  %vm419_vm0 = vcmask 261120   ;;  %p389_p1 = scmp.lt.s32.totalorder %s1282_s30, 1 }
  0x2d   : > { %429 = vmatpush.bf16.msra.mxu0 %v983_v0  ;;  %v1467_v2 = vld [vmem:[%s341_s25] sm:$0xff]  ;;  %v1296_v5 = vmov 0   ;;  %v1297_v6 = vmov 0.0   ;;  %vm461_vm2 = vcmask 64544   ;;  %vm439_vm3 = vcmask 31744   ;;  %s1298_s12 = smov 124  }
  0x2e   : > { %v1471_v3 = vpack.c.bf16 %v1467_v2, %v1467_v2  ;;  %s390_s13 = scalar_select %p389_p1, %s1282_s30, 1  ;;  %1094 = vset.pattern.permute.xlu2 %v1296_v5  ;;  %1095 = vset.pattern.permute.xlu1 %v1296_v5  ;;  %v932_v24 = vld [vmem:[%s1566_s2 + $0x10] sm:$0xf]  ;;  %v987_v25 = vld [vmem:[%s1566_s2 + $0x14] sm:$0xf0]  ;;  %v1300_v36 = vmov 2  }
  0x2f   : > { %v924_v26 = vld [vmem:[%s1566_s2] sm:$0xf]  ;;  %v933_v27 = vor.u32 %v987_v25, %v932_v24  ;;  %v985_v28 = vld [vmem:[%s1566_s2 + $0x4] sm:$0xf0]  ;;  %v496_v35 = vld [vmem:[#allocation6] sm:$0xff]  ;;  %1097 = vset.pattern.permute.xlu0 %v1300_v36  ;;  %v1301_v37 = vmov 1  }
  0x30   : > { %s910_s14 = sshll.u32 %s390_s13, 3  ;;  %v925_v29 = vor.u32 %v985_v28, %v924_v26  ;;  %s1299_s13 = smov 125   ;;  %571 = vmatpush.msra.mxu3 %v496_v35  ;;  %vm491_vm5 = vcmask 23552   ;;  %vm494_vm6 = vcmask 39936   ;;  %vm553_vm7 = vcmask 64512  }
  0x31   : > { %430 = vmatpush.bf16.msra.mxu0 %v982_v1  ;;  %s392_s26 = scalar_lea.vmem %s1565_s1, %s910_s14  ;;  %527 = vmatpush.bf16.msra.mxu1 %v933_v27  ;;  %v1302_v51 = vmov 3   ;;  %v986_v52 = vld [vmem:[%s1566_s2 + $0x14] sm:$0xf]  ;;  %v934_v53 = vld [vmem:[%s1566_s2 + $0x18] sm:$0xf0]  ;;  %v1303_v58 = vmov 4  }
  0x32   : > { %v402_v4 = vld [vmem:[%s392_s26] sm:$0xff]  ;;  %v937_v55 = vor.u32 %v986_v52, %v934_v53  ;;  %v926_v56 = vld [vmem:[%s1566_s2 + $0x8] sm:$0xf0]  ;;  %s1304_s25 = smov 64   ;;  %s1305_s3 = smov 96   ;;  %vm653_vm12 = vcmask 257024  }
  0x33   : > { %vm458_vm1 = vcmp.eq.s32.totalorder %v402_v4, 2  ;;  %vm436_vm4 = vcmp.eq.s32.totalorder %v402_v4, 1  ;;  %v984_v54 = vld [vmem:[%s1566_s2 + $0x4] sm:$0xf]  ;;  %s1306_s7 = smov 32   ;;  %s996_s21 = sshll.u32 %s1282_s30, 4 }
  0x34   : > { %919 = vmatmul.msk.bf16.vlgmr.msra.gmra.mxu0 %vm419_vm0, %v1471_v3  ;;  %v921_v7 = vsel %vm458_vm1, 1.0, %v1297_v6  ;;  %v920_v23 = vsel %vm436_vm4, 1.0, %v1297_v6  ;;  %540 = vmatpush.bf16.msra.mxu2 %v937_v55  ;;  %v929_v57 = vor.u32 %v984_v54, %v926_v56  ;;  %v961_v35 = vld [vmem:[#allocation8 + $0x30] sm:$0xf0]  ;;  %v967_v36 = vld [vmem:[#allocation8 + $0x28] sm:$0xf]  ;;  %s778_s16 = scalar_lea.hbm %s1572_s8, %s996_s21 }
  0x35   : > { %479 = vperm.xlu2 %1094, %v921_v7   ;;  %528 = vmatpush.bf16.msra.mxu1 %v925_v29  ;;  %v951_v54 = vld [vmem:[#allocation8 + $0x8] sm:$0xf]  ;;  %v991_v55 = vld [vmem:[#allocation8 + $0x14] sm:$0xf0]  ;;  %s909_s23 = sshll.u32 %s1449_s20, 4  ;;  %s765_s30 = scalar_lea.sflag [#allocation5], %s1449_s20 }
  0x36   : > { %v952_v56 = vor.u32 %v991_v55, %v951_v54  ;;  %s388_s18 = scalar_lea.vmem [#allocation9], %s909_s23 }
  0x37   : > { %s780_s11 = sshll.u32 %s388_s18, 4  ;;  %s781_s11 = int_to_ptr.vmem [resolvable:$true] %s780_s11 }
  0x38   : > { %938 = vmatmul.msk.bf16.vlgmr.msra.gmra.mxu1 %vm419_vm0, %v1471_v3  ;;  %541 = vmatpush.bf16.msra.mxu2 %v929_v57 }
  0x3b   : > { %939 = vmatmul.msk.bf16.vlgmr.msra.gmra.mxu2 %vm419_vm0, %v1471_v3 }
  0x8f   : > { %v480_v33 = vpop.permute.xlu2 %479 }
  0xb1   : > { %v432_v8 = vpop.f32.mrf.mxu0 }
  0xb2   : > { %v462_v9 = vsel %vm461_vm2, %v432_v8, -inf  ;;  %v440_v10 = vsel %vm439_vm3, %v432_v8, -inf }
  0xb3   : > { %463 = vmax.xlane.f32.xlu0 %v462_v9  ;;  %441 = vmax.xlane.f32.xlu1 %v440_v10 }
  0xb5   : > { %v530_v44 = vpop.f32.mrf.mxu1 }
  0xb9   : > { %v434_v11 = vpop.f32.mrf.mxu0 }
  0xbd   : > { %v532_v50 = vpop.f32.mrf.mxu1 }
  0xbe   : > { %v543_v1 = vpop.f32.mrf.mxu2  ;;  %v988_v50 = vld [vmem:[#allocation8 + $0x4] sm:$0xf] }
  0xc6   : > { %v545_v4 = vpop.f32.mrf.mxu2 }
 0x126   : > { %v464_v12 = vpop.xlane.xlu0 %463  ;;  %v442_v13 = vpop.xlane.xlu1 %441 }
 0x127   : > { %v465_v14 = vsub.f32 %v432_v8, %v464_v12  ;;  %v443_v15 = vsub.f32 %v432_v8, %v442_v13 }
 0x129   : > { %v466_v16 = vmul.f32 1.442695, %v465_v14  ;;  %v444_v17 = vmul.f32 1.442695, %v443_v15 }
 0x12b   : > { %1102 = vpow2.f32 %v466_v16 }
 0x12c   : > { %1104 = vpow2.f32 %v444_v17 }
 0x131   : > { %v1103_v18 = vpop.eup %1102 }
 0x132   : > { %v1105_v19 = vpop.eup %1104  ;;  %469 = vrot.lane.b32.xlu0 %v1103_v18, %s1298_s12 }
 0x133   : > { %v446_v20 = vsel %vm439_vm3, %v1105_v19, 0.0 }
 0x134   : > { %447 = vadd.xlane.f32.xlu2 %v446_v20 }
 0x1a4   : > { %v470_v21 = vpop.permute.xlu0 %469 }
 0x1a5   : > { %v472_v22 = vsel %vm439_vm3, %v470_v21, 0.0 }
 0x1a6   : > { %473 = vadd.xlane.f32.xlu1 %v472_v22 }
 0x1a7   : > { %v448_v38 = vpop.xlane.xlu2 %447 }
 0x1bf   : > { %453 = vperm.xlu1 %1095, %v920_v23  }
 0x1c7   : > { %1096 = vset.pattern.permute.xlu1 %v1301_v37  ;;  %v995_v37 = vld [vmem:[#allocation8 + $0x34] sm:$0xf0] }
 0x219   : > { %v474_v30 = vpop.xlane.xlu1 %473 }
 0x21a   : > { %1106 = vrcp.f32 %v474_v30  ;;  %v993_v30 = vld [vmem:[#allocation8 + $0x2c] sm:$0xf] }
 0x21b   : > { %1108 = vrcp.f32 %v448_v38 }
 0x220   : > { %v1107_v31 = vpop.eup %1106 }
 0x221   : > { %v476_v32 = vmul.f32 %v1107_v31, %v1103_v18  ;;  %v1109_v39 = vpop.eup %1108  ;;  %v1307_v18 = vmov 32.0   ;;  %v969_v31 = vld [vmem:[#allocation8 + $0x38] sm:$0xf0] }
 0x222   : > { %v450_v41 = vmul.f32 %v1109_v39, %v1105_v19  ;;  %1110 = vrcp.f32 %v1307_v18 }
 0x223   : > { %v482_v34 = vmul.f32 %v480_v33, %v476_v32  ;;  %v992_v32 = vld [vmem:[#allocation8 + $0x24] sm:$0xf] }
 0x224   : > { %v964_v39 = vor.u32 %v992_v32, %v961_v35 }
 0x225   : > { %484 = vrot.lane.b32.xlu0 %v482_v34, %s1298_s12 }
 0x226   : > { %727 = vmatpush.bf16.msrb.mxu0 %v964_v39 }
 0x228   : > { %v1111_v19 = vpop.eup %1110 }
 0x229   : > { %v616_v20 = vmul.f32 32.0, %v1111_v19  ;;  %vm620_vm8 = vweird.f32 %v1111_v19 }
 0x22b   : > { %v617_v21 = vsub.f32 1.0, %v616_v20 }
 0x22d   : > { %488 = vrot.lane.b32.xlu0 %v482_v34, %s1299_s13  ;;  %v618_v22 = vmul.f32 %v1111_v19, %v617_v21  ;;  %v972_v34 = vor.u32 %v993_v30, %v969_v31  ;;  %s1224_s13 = scalar_lea.hbm %s1572_s8, 32 }
 0x22f   : > { %v619_v23 = vadd.f32 %v1111_v19, %v618_v22  ;;  %753 = vmatpush.bf16.msrb.mxu2 %v972_v34 }
 0x231   : > { %v454_v40 = vpop.permute.xlu1 %453  ;;  %v621_v24 = vsel %vm620_vm8, %v1111_v19, %v619_v23 }
 0x232   : > { %v456_v43 = vmul.f32 %v454_v40, %v450_v41  ;;  %v968_v40 = vor.u32 %v995_v37, %v967_v36  ;;  %v959_v41 = vld [vmem:[#allocation8 + $0x20] sm:$0xf] }
 0x234   : > { %740 = vmatpush.bf16.msrb.mxu1 %v968_v40 }
 0x238   : > { %741 = vmatpush.bf16.msrb.mxu1 %v952_v56 }
 0x297   : > { %v485_v42 = vpop.permute.xlu0 %484 }
 0x298   : > { %v487_v45 = vadd.f32 %v485_v42, %v456_v43  ;;  %v994_v42 = vld [vmem:[#allocation8 + $0x2c] sm:$0xf0] }
 0x29a   : > { %v492_v47 = vsel %vm491_vm5, %v487_v45, %v456_v43  ;;  %v989_v43 = vld [vmem:[#allocation8 + $0xc] sm:$0xf]  ;;  %v953_v45 = vld [vmem:[#allocation8 + $0x18] sm:$0xf0] }
 0x29f   : > { %v489_v46 = vpop.permute.xlu0 %488 }
 0x2a0   : > { %v493_v48 = vsel %vm439_vm3, %v492_v47, %v489_v46  ;;  %v943_v46 = vld [vmem:[#allocation8] sm:$0xf]  ;;  %v990_v47 = vld [vmem:[#allocation8 + $0xc] sm:$0xf0] }
 0x2a1   : > { %v495_v49 = vsel %vm494_vm6, %v493_v48, 0.0  ;;  %v944_v52 = vor.u32 %v990_v47, %v943_v46 }
 0x2a2   : > { %549 = vperm.xlu2 %1094, %v495_v49   ;;  %587 = vperm.xlu0 %1097, %v495_v49  }
 0x2a3   : > { %577 = vperm.xlu1 %1096, %v495_v49   ;;  %940 = vmatmul.msk.f32.vlgmr.msra.gmra.mxu3 %vm553_vm7, %v495_v49 }
 0x2aa   : > { %1099 = vset.pattern.permute.xlu0 %v1303_v58 }
 0x2ab   : > { %1098 = vset.pattern.permute.xlu1 %v1302_v51  ;;  %v945_v51 = vld [vmem:[#allocation8 + $0x10] sm:$0xf0] }
 0x2ac   : > { %597 = vperm.xlu1 %1098, %v495_v49   ;;  %v948_v53 = vor.u32 %v988_v50, %v945_v51 }
 0x2ae   : > { %728 = vmatpush.bf16.msrb.mxu0 %v948_v53 }
 0x2fc   : > { %v550_v5 = vpop.permute.xlu2 %549 }
 0x2fd   : > { %v552_v7 = vmul.f32 %v550_v5, %v530_v44 }
 0x314   : > { %v588_v59 = vpop.permute.xlu0 %587 }
 0x315   : > { %v590_v60 = vmul.f32 %v588_v59, %v530_v44  ;;  %v578_v61 = vpop.permute.xlu1 %577 }
 0x316   : > { %v580_v62 = vmul.f32 %v578_v61, %v530_v44 }
 0x317   : > { %592 = vrot.lane.b32.xlu0 %v590_v60, %s1304_s25  ;;  %s782_s25 = sshll.u32 %s778_s16, 4  ;;  %s783_s25 = int_to_ptr.hbm [resolvable:$true] %s782_s25 }
 0x318   : > { %582 = vrot.lane.b32.xlu1 %v580_v62, %s1305_s3  ;;  %s1218_s3 = sshra.s32 %s783_s25, 4  ;;  %s1219_s3 = int_to_ptr.hbm [resolvable:$true] %s1218_s3 }
 0x319   : > { %p1225_p12 = scmp.lt.s32.totalorder %s1219_s3, %s1572_s8 }
 0x31e   : > { %v598_v63 = vpop.permute.xlu1 %597 }
 0x31f   : > { %v600_v0 = vmul.f32 %v598_v63, %v530_v44  ;;  %607 = vperm.xlu0 %1099, %v495_v49   ;;  %v960_v44 = vor.u32 %v994_v42, %v959_v41  ;;  %v956_v49 = vor.u32 %v989_v43, %v953_v45  ;;  %v1100_v63 = vld [vmem:[%s1569_s5] ss:$0 sm:$0xff] }
 0x321   : > { %602 = vrot.lane.b32.xlu1 %v600_v0, %s1306_s7  ;;  %714 = vmatpush.bf16.msrb.mxu3 %v960_v44  ;;  %s1220_s7 = scalar_lea.hbm %s1219_s3, 16 }
 0x322   : > { %754 = vmatpush.bf16.msrb.mxu2 %v956_v49  ;;  %p1221_p3 = scmp.ne.s32.totalorder %s1219_s3, %s1220_s7  ;;  %p1226_p13 = scmp.lt.s32.totalorder %s1224_s13, %s1220_s7 }
 0x324   : > { %p1222_p7 = pnand %p1221_p3, %p1429_p2  ;;  %p1227_p0 = por %p1226_p13, %p1225_p12 }
 0x325   : > { %715 = vmatpush.bf16.msrb.mxu3 %v944_v52 }
 0x326   : > { %v573_v6 = vpop.f32.mrf.mxu3  ;;  %p1223_p11 = pneg %p1222_p7 }
 0x327   : > { %v574_v9 = vadd.f32 %v573_v6, %v552_v7 }
 0x328   : > { %p1228_p4 = pnand %p1227_p0, %p1223_p11 }
 0x389   : > { %v593_v3 = vpop.permute.xlu0 %592 }
 0x38a   : > { %v583_v8 = vpop.permute.xlu1 %582 }
 0x38b   : > { %v585_v10 = vadd.f32 %v583_v8, %v574_v9 }
 0x38d   : > { %v595_v13 = vadd.f32 %v593_v3, %v585_v10 }
 0x391   : > { %v608_v11 = vpop.permute.xlu0 %607 }
 0x392   : > { %v610_v12 = vmul.f32 %v608_v11, %v543_v1  ;;  %v1101_v1 = vld [vmem:[%s1570_s6] ss:$0 sm:$0xff] }
 0x393   : > { %v603_v14 = vpop.permute.xlu1 %602 }
 0x394   : > { %v605_v15 = vadd.f32 %v603_v14, %v595_v13 }
 0x396   : > { %v611_v16 = vadd.f32 %v610_v12, %v605_v15 }
 0x398   : > { %v612_v17 = vsel %vm419_vm0, %v611_v16, 0.0 }
 0x399   : > { %613 = vadd.xlane.f32.xlu1 %v612_v17 }
 0x40c   : > { %v614_v25 = vpop.xlane.xlu1 %613 }
 0x40d   : > { %v622_v26 = vmul.f32 %v621_v24, %v614_v25 }
 0x40f   : > { %v623_v27 = vsub.f32 %v611_v16, %v622_v26 }
 0x411   : > { %v624_v28 = vmul.f32 %v623_v27, %v623_v27 }
 0x413   : > { %v625_v29 = vsel %vm419_vm0, %v624_v28, 0.0 }
 0x414   : > { %626 = vadd.xlane.f32.xlu2 %v625_v29 }
 0x487   : > { %v627_v33 = vpop.xlane.xlu2 %626 }
 0x488   : > { %v628_v38 = vmul.f32 %v627_v33, %v621_v24 }
 0x48a   : > { %v629_v48 = vadd.f32 1e-05, %v628_v38 }
 0x48c   : > { %1112 = vrsqrt.f32 %v629_v48  ;;  %vm636_vm10 = vweird.f32 %v629_v48 }
 0x492   : > { %v1113_v57 = vpop.eup %1112 }
 0x493   : > { %v631_v58 = vmul.f32 %v1113_v57, %v629_v48  ;;  %vm637_vm9 = vweird.f32 %v1113_v57 }
 0x494   : > { %vm638_vm11 = vmor %vm636_vm10, %vm637_vm9 }
 0x495   : > { %v632_v59 = vmul.f32 %v1113_v57, %v631_v58 }
 0x497   : > { %v633_v60 = vmul.f32 0.5, %v632_v59 }
 0x499   : > { %v634_v61 = vsub.f32 1.5, %v633_v60 }
 0x49b   : > { %v635_v62 = vmul.f32 %v1113_v57, %v634_v61 }
 0x49d   : > { %v639_v0 = vsel %vm638_vm11, %v1113_v57, %v635_v62 }
 0x49e   : > { %v640_v4 = vmul.f32 %v639_v0, %v623_v27 }
 0x4a0   : > { %v645_v5 = vmul.f32 %v1100_v63, %v640_v4 }
 0x4a2   : > { %v650_v6 = vadd.f32 %v1101_v1, %v645_v5 }
 0x4a4   : > { %v651_v3 = vadd.f32 %v650_v6, %v1467_v2 }
 0x4a6   : > { %v652_v7 = vpack.c.bf16 %v651_v3, %v651_v3 }
 0x4a8   : > { %654 = vst.msk [vmem:[#allocation2] sm:$0xf] %vm653_vm12, %v652_v7 }
 0x4af   : > { %v655_v8 = vld [vmem:[#allocation2] sm:$0xf] }
 0x4b0   : > { %973 = vmatmul.msk.bf16.vlgmr.msrb.gmra.mxu3 %vm419_vm0, %v655_v8  ;;  %974 = vmatmul.msk.bf16.vlgmr.msrb.gmra.mxu0 %vm419_vm0, %v655_v8 }
 0x4b1   : > { %975 = vmatmul.msk.bf16.vlgmr.msrb.gmra.mxu1 %vm419_vm0, %v655_v8  ;;  %976 = vmatmul.msk.bf16.vlgmr.msrb.gmra.mxu2 %vm419_vm0, %v655_v8 }
 0x52d   : > { %v730_v9 = vpop.f32.mrf.mxu0 }
 0x52e   : > { %v743_v10 = vpop.f32.mrf.mxu1 }
 0x533   : > { %v717_v2 = vpop.f32.mrf.mxu3 }
 0x534   : > { %v760_v11 = vpack.c.bf16 %v730_v9, %v717_v2  ;;  %v756_v12 = vpop.f32.mrf.mxu2 }
 0x535   : > { %v761_v13 = vpack.c.bf16 %v756_v12, %v743_v10  ;;  %v732_v14 = vpop.f32.mrf.mxu0 }
 0x536   : > { %762 = vst [vmem:[%s388_s18] sm:$0xff] %v760_v11  ;;  %v745_v15 = vpop.f32.mrf.mxu1 }
 0x537   : > { %763 = vst [vmem:[%s388_s18 + $0x8] sm:$0xff] %v761_v13 }
 0x538   : > { %1231 = shalt.err (!%p1228_p4)
}
 0x539   : > { %1007 = dma.vmem_to_hbm [thread:$0]  (%p1429_p2), %s781_s11, 256, %s783_s25, %s765_s30  }
 0x53b   : > { %v719_v16 = vpop.f32.mrf.mxu3 }
 0x53c   : > { %v758_v17 = vpop.f32.mrf.mxu2 }
 0x53d PF: > { %s794_s23 = sand.u32 1, %s1270_s27   ;;  %p1021_p6 = pnand %p902_p8, %p1400_p5 }
 0x53e   : > { %s795_s26 = scalar_lea.sflag [#allocation5], %s794_s23 }
 0x53f   : > { %p1022_p9 = pneg %p1021_p6 }
 0x541   : > { %1265 = dma.done.wait (%p1022_p9), %s795_s26, 256  }
 0x542   : > { %1267 = vsyncadd (%p1022_p9), %s795_s26, 4294967040  ;;  %s25_s10 = sadd.s32 1, %s1290_s10   ;;  %s1585_s27 = smov %s1274_s28 }
 0x543   : > { %p22_p10 = scmp.ge.s32.totalorder %s25_s10, 4   ;;  %s1586_s28 = smov %s1278_s29 }
 0x544   : > { %s1587_s29 = smov %s1439_s24  ;;  %s1588_s30 = smov %s1286_s9 }
 0x545   : > { %s1589_s9 = smov %s1591_s17  ;;  %24 = sbr.rel (!%p22_p10) target bundleno = 10 (0xa), region = 113 }
 0x54a   :  { %801 = vsyncpa [#allocation4], 1 }
 0x54b   :  { %803 = vsyncpa [#allocation4 + $0x1], 1 }
 0x54c   :  { %804 = vsyncpa [#allocation7], 1 }
 0x54d   :  { %805 = vsyncpa [#allocation5], 1 }
 0x54e   :  { %807 = vsyncpa [#allocation5 + $0x1], 1 }

</bundles_post_ra>
